<compile_context>
chip_gen: v7x
topology: tpu7x:2x2x1
jax: 0.10.0
libtpu: 0.0.40
codegen_flags: <defaults>
</compile_context>

<pallas_src>
import jax
import jax.numpy as jnp
from jax.experimental import pallas as pl
from jax.experimental.pallas import tpu as pltpu

# ----------------------------- config -----------------------------
B = 2            # batch
T = 8            # max_seq_len
E = 32           # embedding_size == LSTM input_size == LSTM hidden_size
K = 8            # num_clusters
NUM_LAYERS = 2   # LSTM layers
C_IN, H, W = 4, 16, 16   # input_shape of cur_chunk (C, H, W)
C1 = 32          # frontend conv channels
FRONT_DIM = E - K        # frontend embedding dim (cluster_encode pads it back to E)
HW = H * W
OUT_W = 128      # lane-dense packed output width


# ----------------------------- fused kernel -----------------------------
def _qnet_fused_kernel(patch_ref, cw_ref, cb_ref, fw_ref, fb_ref,
                       emb_ref,
                       wih0_ref, whh0_ref, b0_ref,
                       wih1_ref, whh1_ref, b1_ref,
                       cent_ref, wq_ref, bq_ref, wk_ref, bk_ref, v_ref,
                       out_ref):
    f32 = jnp.float32

    # ---- frontend: conv3x3 (im2col matmul) + ReLU + global mean pool + FC ----
    h = jnp.dot(patch_ref[...], cw_ref[...], preferred_element_type=f32)   # (B*HW, C1)
    h = jnp.maximum(h + cb_ref[...], 0.0)
    pooled = jnp.concatenate(
        [jnp.mean(h[b * HW:(b + 1) * HW, :], axis=0, keepdims=True) for b in range(B)],
        axis=0)                                                            # (B, C1)
    # fc weights pre-padded with K zero cols -> feat_pad == cat([feature, zeros(K)])
    feat_pad = jnp.dot(pooled, fw_ref[...], preferred_element_type=f32) + fb_ref[...]  # (B, E)

    # ---- LSTM weights: load once, stay vreg-resident ----
    wih0 = wih0_ref[...]; whh0 = whh0_ref[...]; b0 = b0_ref[...]
    wih1 = wih1_ref[...]; whh1 = whh1_ref[...]; b1 = b1_ref[...]

    def lstm_scan(gx, whh, h0, c0, t_steps):
        # gx: (t_steps*B, 4E) = x @ wih + b (time-major), precomputed outside the loop.
        # PyTorch gate order i, f, g, o.
        hcur, ccur = h0, c0
        hs = []
        for t in range(t_steps):                                           # static unroll
            gates = gx[t * B:(t + 1) * B, :] + jnp.dot(
                hcur, whh, preferred_element_type=f32)                     # (B, 4E)
            sg = jax.nn.sigmoid(gates)                                     # full-width EUP
            tg = jnp.tanh(gates)
            i = sg[:, 0 * E:1 * E]
            f = sg[:, 1 * E:2 * E]
            g = tg[:, 2 * E:3 * E]
            o = sg[:, 3 * E:4 * E]
            ccur = f * ccur + i * g
            hcur = o * jnp.tanh(ccur)
            hs.append(hcur)
        return hs, hcur, ccur

    zeros_be = jnp.zeros((B, E), f32)

    # sequence pass, layer 0 (hoisted input projection: one (T*B,E)@(E,4E) matmul)
    gx0 = jnp.dot(emb_ref[...], wih0, preferred_element_type=f32) + b0     # (T*B, 4E)
    hs0, hn0, cn0 = lstm_scan(gx0, whh0, zeros_be, zeros_be, T)
    hseq0 = jnp.concatenate(hs0, axis=0)                                   # (T*B, E)

    # sequence pass, layer 1
    gx1 = jnp.dot(hseq0, wih1, preferred_element_type=f32) + b1
    _, hn1, cn1 = lstm_scan(gx1, whh1, zeros_be, zeros_be, T)

    # single-step pass on cluster-encoded feature, seeded with (hn, cn)
    gs0 = jnp.dot(feat_pad, wih0, preferred_element_type=f32) + b0
    s0, _, _ = lstm_scan(gs0, whh0, hn0, cn0, 1)
    gs1 = jnp.dot(s0[0], wih1, preferred_element_type=f32) + b1
    s1, _, _ = lstm_scan(gs1, whh1, hn1, cn1, 1)
    ccl = s1[0]                                                            # (B, E)

    # ---- PointerAttention: v . tanh(Wq x + Wk C) ----
    a = jnp.dot(ccl, wq_ref[...], preferred_element_type=f32) + bq_ref[...]          # (B, E)
    kp = jnp.dot(cent_ref[...], wk_ref[...], preferred_element_type=f32) + bk_ref[...]  # (B*K, E)
    v = v_ref[...]                                                                    # (1, E)
    q_rows = []
    for b in range(B):
        e_b = jnp.tanh(kp[b * K:(b + 1) * K, :] + a[b:b + 1, :])           # (K, E)
        q_rows.append(jnp.sum(e_b * v, axis=-1)[None, :])                  # (1, K)
    q = jnp.concatenate(q_rows, axis=0)                                    # (B, K)

    # ---- lane-dense packed output: [q | ccl | feat_pad | 0] -> (B, 128) ----
    pad = jnp.zeros((B, OUT_W - (K + E + E)), f32)
    out_ref[...] = jnp.concatenate([q, ccl, feat_pad, pad], axis=-1)


# ----------------------------- wrapper -----------------------------
def _im2col_3x3_same(x):
    # x: (B, H, W, C) NHWC  ->  (B*H*W, 9*C)
    b, h, w, c = x.shape
    xp = jnp.pad(x, ((0, 0), (1, 1), (1, 1), (0, 0)))
    cols = [xp[:, i:i + h, j:j + w, :] for i in range(3) for j in range(3)]
    return jnp.concatenate(cols, axis=-1).reshape(b * h * w, 9 * c)


def qnet_forward(params, embedds, cur_chunk, centroids, lens=None):
    # lens is unused: mode='eval' (pack_padded_sequence only applies in 'train').
    del lens
    fp = params["frontend"]
    ap = params["attn"]
    l0, l1 = params["lstm"]

    patches = _im2col_3x3_same(cur_chunk)                                # (B*HW, 9*C_IN)
    emb_flat = jnp.transpose(embedds, (1, 0, 2)).reshape(T * B, E)       # time-major
    cent_flat = centroids.reshape(B * K, E)
    fc_w_pad = jnp.pad(fp["fc_w"], ((0, 0), (0, K)))                     # (C1, E)
    fc_b_pad = jnp.pad(fp["fc_b"], ((0, 0), (0, K)))                     # (1, E)

    args = (patches, fp["conv_w"], fp["conv_b"], fc_w_pad, fc_b_pad,
            emb_flat,
            l0["wih"], l0["whh"], l0["b"],
            l1["wih"], l1["whh"], l1["b"],
            cent_flat, ap["wq"], ap["bq"], ap["wk"], ap["bk"], ap["v"])

    in_specs = [pl.BlockSpec(a.shape, lambda i: (0, 0)) for a in args]

    slab = pl.pallas_call(
        _qnet_fused_kernel,
        out_shape=jax.ShapeDtypeStruct((B, OUT_W), jnp.float32),
        grid=(1,),
        in_specs=in_specs,
        out_specs=pl.BlockSpec((B, OUT_W), lambda i: (0, 0)),
        compiler_params=pltpu.CompilerParams(dimension_semantics=("arbitrary",)),
    )(*args)

    q = slab[:, :K]
    cur_cluster_embedd = slab[:, K:K + E].reshape(B, 1, E)
    new_feature = slab[:, K + E:K + E + FRONT_DIM]
    return {"q": q, "cur_cluster_embedd": cur_cluster_embedd, "new_feature": new_feature}


qnet_forward_jit = jax.jit(qnet_forward)


# ----------------------------- deterministic params -----------------------------
def init_params(key):
    keys = jax.random.split(key, 16)
    s = 0.1

    def rn(k, shape):
        return (s * jax.random.normal(k, shape)).astype(jnp.float32)

    frontend = {
        "conv_w": rn(keys[0], (9 * C_IN, C1)),
        "conv_b": rn(keys[1], (1, C1)),
        "fc_w": rn(keys[2], (C1, FRONT_DIM)),
        "fc_b": rn(keys[3], (1, FRONT_DIM)),
    }
    lstm = []
    for l in range(NUM_LAYERS):
        kk = jax.random.split(keys[4 + l], 3)
        lstm.append({
            # pre-transposed: x @ wih == x @ weight_ih.T ; gate order i,f,g,o
            "wih": rn(kk[0], (E, 4 * E)),
            "whh": rn(kk[1], (E, 4 * E)),
            "b": rn(kk[2], (1, 4 * E)),   # b_ih + b_hh combined
        })
    attn = {
        "wq": rn(keys[8], (E, E)),
        "bq": rn(keys[9], (1, E)),
        "wk": rn(keys[10], (E, E)),
        "bk": rn(keys[11], (1, E)),
        "v": rn(keys[12], (1, E)),        # Linear(E, 1, bias=False) weight row
    }
    return {"frontend": frontend, "lstm": lstm, "attn": attn}


# ----------------------------- main -----------------------------
if __name__ == "__main__":
    root = jax.random.PRNGKey(0)
    kprm, ke, kc, kt = jax.random.split(root, 4)

    params = init_params(kprm)
    embedds = jax.random.normal(ke, (B, T, E), jnp.float32)          # (B, max_seq_len, E)
    cur_chunk = jax.random.normal(kc, (B, H, W, C_IN), jnp.float32)  # layout: NHWC
    centroids = jax.random.normal(kt, (B, K, E), jnp.float32)        # (B, num_clusters, E)

    out = qnet_forward_jit(params, embedds, cur_chunk, centroids, lens=None)
    out = jax.block_until_ready(out)

    assert out["q"].shape == (B, K)
    assert out["cur_cluster_embedd"].shape == (B, 1, E)
    assert out["new_feature"].shape == (B, FRONT_DIM)
    assert all(bool(jnp.all(jnp.isfinite(v))) for v in out.values())
    print("KERNEL_OK")
</pallas_src>

<mosaic_0001>
module attributes {stable_mosaic.version = 11 : i64} {
  func.func @_qnet_fused_kernel(%arg0: i32, %arg1: memref<512x36xf32, #tpu.memory_space<vmem>>, %arg2: memref<36x32xf32, #tpu.memory_space<vmem>>, %arg3: memref<1x32xf32, #tpu.memory_space<vmem>>, %arg4: memref<32x32xf32, #tpu.memory_space<vmem>>, %arg5: memref<1x32xf32, #tpu.memory_space<vmem>>, %arg6: memref<16x32xf32, #tpu.memory_space<vmem>>, %arg7: memref<32x128xf32, #tpu.memory_space<vmem>>, %arg8: memref<32x128xf32, #tpu.memory_space<vmem>>, %arg9: memref<1x128xf32, #tpu.memory_space<vmem>>, %arg10: memref<32x128xf32, #tpu.memory_space<vmem>>, %arg11: memref<32x128xf32, #tpu.memory_space<vmem>>, %arg12: memref<1x128xf32, #tpu.memory_space<vmem>>, %arg13: memref<16x32xf32, #tpu.memory_space<vmem>>, %arg14: memref<32x32xf32, #tpu.memory_space<vmem>>, %arg15: memref<1x32xf32, #tpu.memory_space<vmem>>, %arg16: memref<32x32xf32, #tpu.memory_space<vmem>>, %arg17: memref<1x32xf32, #tpu.memory_space<vmem>>, %arg18: memref<1x32xf32, #tpu.memory_space<vmem>>, %arg19: memref<2x128xf32, #tpu.memory_space<vmem>>) attributes {dimension_semantics = [#tpu.dimension_semantics<arbitrary>], iteration_bounds = array<i64: 1>, scalar_prefetch = 0 : i64, scratch_operands = 0 : i64, tpu.core_type = #tpu.core_type<tc>, window_params = [{pipeline_mode = #tpu.pipeline_mode<synchronous>, transform_indices = @transform_0, window_bounds = array<i64: 512, 36>}, {pipeline_mode = #tpu.pipeline_mode<synchronous>, transform_indices = @transform_1, window_bounds = array<i64: 36, 32>}, {pipeline_mode = #tpu.pipeline_mode<synchronous>, transform_indices = @transform_2, window_bounds = array<i64: 1, 32>}, {pipeline_mode = #tpu.pipeline_mode<synchronous>, transform_indices = @transform_3, window_bounds = array<i64: 32, 32>}, {pipeline_mode = #tpu.pipeline_mode<synchronous>, transform_indices = @transform_4, window_bounds = array<i64: 1, 32>}, {pipeline_mode = #tpu.pipeline_mode<synchronous>, transform_indices = @transform_5, window_bounds = array<i64: 16, 32>}, {pipeline_mode = #tpu.pipeline_mode<synchronous>, transform_indices = @transform_6, window_bounds = array<i64: 32, 128>}, {pipeline_mode = #tpu.pipeline_mode<synchronous>, transform_indices = @transform_7, window_bounds = array<i64: 32, 128>}, {pipeline_mode = #tpu.pipeline_mode<synchronous>, transform_indices = @transform_8, window_bounds = array<i64: 1, 128>}, {pipeline_mode = #tpu.pipeline_mode<synchronous>, transform_indices = @transform_9, window_bounds = array<i64: 32, 128>}, {pipeline_mode = #tpu.pipeline_mode<synchronous>, transform_indices = @transform_10, window_bounds = array<i64: 32, 128>}, {pipeline_mode = #tpu.pipeline_mode<synchronous>, transform_indices = @transform_11, window_bounds = array<i64: 1, 128>}, {pipeline_mode = #tpu.pipeline_mode<synchronous>, transform_indices = @transform_12, window_bounds = array<i64: 16, 32>}, {pipeline_mode = #tpu.pipeline_mode<synchronous>, transform_indices = @transform_13, window_bounds = array<i64: 32, 32>}, {pipeline_mode = #tpu.pipeline_mode<synchronous>, transform_indices = @transform_14, window_bounds = array<i64: 1, 32>}, {pipeline_mode = #tpu.pipeline_mode<synchronous>, transform_indices = @transform_15, window_bounds = array<i64: 32, 32>}, {pipeline_mode = #tpu.pipeline_mode<synchronous>, transform_indices = @transform_16, window_bounds = array<i64: 1, 32>}, {pipeline_mode = #tpu.pipeline_mode<synchronous>, transform_indices = @transform_17, window_bounds = array<i64: 1, 32>}, {pipeline_mode = #tpu.pipeline_mode<synchronous>, transform_indices = @transform_18, window_bounds = array<i64: 2, 128>}]} {
    %c0 = arith.constant 0 : index
    %c0_0 = arith.constant 0 : index
    %0 = vector.load %arg1[%c0, %c0_0] : memref<512x36xf32, #tpu.memory_space<vmem>>, vector<512x36xf32>
    %c0_1 = arith.constant 0 : index
    %c0_2 = arith.constant 0 : index
    %1 = vector.load %arg2[%c0_1, %c0_2] : memref<36x32xf32, #tpu.memory_space<vmem>>, vector<36x32xf32>
    %cst = arith.constant dense<0.000000e+00> : vector<512x32xf32>
    %2 = tpu.matmul %0, %1, %cst {dimension_numbers = #tpu.dot_dimension_numbers<[1], [0], [0], [1], [0, 0, 1, 1], [], []>} : vector<512x36xf32>, vector<36x32xf32>, vector<512x32xf32> -> vector<512x32xf32>
    %c0_3 = arith.constant 0 : index
    %c0_4 = arith.constant 0 : index
    %3 = vector.load %arg3[%c0_3, %c0_4] : memref<1x32xf32, #tpu.memory_space<vmem>>, vector<1x32xf32>
    %4 = vector.broadcast %3 : vector<1x32xf32> to vector<512x32xf32>
    %5 = arith.addf %2, %4 : vector<512x32xf32>
    %cst_5 = arith.constant 0.000000e+00 : f32
    %6 = vector.broadcast %cst_5 : f32 to vector<512x32xf32>
    %7 = arith.maximumf %5, %6 : vector<512x32xf32>
    %8 = vector.extract_strided_slice %7 {offsets = [0, 0], sizes = [256, 32], strides = [1, 1]} : vector<512x32xf32> to vector<256x32xf32>
    %cst_6 = arith.constant dense<0.000000e+00> : vector<32xf32>
    %9 = vector.multi_reduction <add>, %8, %cst_6 [0] : vector<256x32xf32> to vector<32xf32>
    %10 = vector.shape_cast %9 : vector<32xf32> to vector<1x32xf32>
    %cst_7 = arith.constant 2.560000e+02 : f32
    %11 = vector.broadcast %cst_7 : f32 to vector<1x32xf32>
    %12 = arith.divf %10, %11 : vector<1x32xf32>
    %13 = vector.extract_strided_slice %7 {offsets = [256, 0], sizes = [256, 32], strides = [1, 1]} : vector<512x32xf32> to vector<256x32xf32>
    %cst_8 = arith.constant dense<0.000000e+00> : vector<32xf32>
    %14 = vector.multi_reduction <add>, %13, %cst_8 [0] : vector<256x32xf32> to vector<32xf32>
    %15 = vector.shape_cast %14 : vector<32xf32> to vector<1x32xf32>
    %cst_9 = arith.constant 2.560000e+02 : f32
    %16 = vector.broadcast %cst_9 : f32 to vector<1x32xf32>
    %17 = arith.divf %15, %16 : vector<1x32xf32>
    %18 = tpu.concatenate %12, %17 in 0 : vector<1x32xf32>, vector<1x32xf32> -> vector<2x32xf32>
    %c0_10 = arith.constant 0 : index
    %c0_11 = arith.constant 0 : index
    %19 = vector.load %arg4[%c0_10, %c0_11] : memref<32x32xf32, #tpu.memory_space<vmem>>, vector<32x32xf32>
    %cst_12 = arith.constant dense<0.000000e+00> : vector<2x32xf32>
    %20 = tpu.matmul %18, %19, %cst_12 {dimension_numbers = #tpu.dot_dimension_numbers<[1], [0], [0], [1], [0, 0, 1, 1], [], []>} : vector<2x32xf32>, vector<32x32xf32>, vector<2x32xf32> -> vector<2x32xf32>
    %c0_13 = arith.constant 0 : index
    %c0_14 = arith.constant 0 : index
    %21 = vector.load %arg5[%c0_13, %c0_14] : memref<1x32xf32, #tpu.memory_space<vmem>>, vector<1x32xf32>
    %22 = vector.broadcast %21 : vector<1x32xf32> to vector<2x32xf32>
    %23 = arith.addf %20, %22 : vector<2x32xf32>
    %c0_15 = arith.constant 0 : index
    %c0_16 = arith.constant 0 : index
    %24 = vector.load %arg7[%c0_15, %c0_16] : memref<32x128xf32, #tpu.memory_space<vmem>>, vector<32x128xf32>
    %c0_17 = arith.constant 0 : index
    %c0_18 = arith.constant 0 : index
    %25 = vector.load %arg8[%c0_17, %c0_18] : memref<32x128xf32, #tpu.memory_space<vmem>>, vector<32x128xf32>
    %c0_19 = arith.constant 0 : index
    %c0_20 = arith.constant 0 : index
    %26 = vector.load %arg9[%c0_19, %c0_20] : memref<1x128xf32, #tpu.memory_space<vmem>>, vector<1x128xf32>
    %c0_21 = arith.constant 0 : index
    %c0_22 = arith.constant 0 : index
    %27 = vector.load %arg10[%c0_21, %c0_22] : memref<32x128xf32, #tpu.memory_space<vmem>>, vector<32x128xf32>
    %c0_23 = arith.constant 0 : index
    %c0_24 = arith.constant 0 : index
    %28 = vector.load %arg11[%c0_23, %c0_24] : memref<32x128xf32, #tpu.memory_space<vmem>>, vector<32x128xf32>
    %c0_25 = arith.constant 0 : index
    %c0_26 = arith.constant 0 : index
    %29 = vector.load %arg12[%c0_25, %c0_26] : memref<1x128xf32, #tpu.memory_space<vmem>>, vector<1x128xf32>
    %cst_27 = arith.constant 0.000000e+00 : f32
    %30 = vector.broadcast %cst_27 : f32 to vector<2x32xf32>
    %c0_28 = arith.constant 0 : index
    %c0_29 = arith.constant 0 : index
    %31 = vector.load %arg6[%c0_28, %c0_29] : memref<16x32xf32, #tpu.memory_space<vmem>>, vector<16x32xf32>
    %cst_30 = arith.constant dense<0.000000e+00> : vector<16x128xf32>
    %32 = tpu.matmul %31, %24, %cst_30 {dimension_numbers = #tpu.dot_dimension_numbers<[1], [0], [0], [1], [0, 0, 1, 1], [], []>} : vector<16x32xf32>, vector<32x128xf32>, vector<16x128xf32> -> vector<16x128xf32>
    %33 = vector.broadcast %26 : vector<1x128xf32> to vector<16x128xf32>
    %34 = arith.addf %32, %33 : vector<16x128xf32>
    %35 = vector.extract_strided_slice %34 {offsets = [0, 0], sizes = [2, 128], strides = [1, 1]} : vector<16x128xf32> to vector<2x128xf32>
    %cst_31 = arith.constant dense<0.000000e+00> : vector<2x128xf32>
    %36 = tpu.matmul %30, %25, %cst_31 {dimension_numbers = #tpu.dot_dimension_numbers<[1], [0], [0], [1], [0, 0, 1, 1], [], []>} : vector<2x32xf32>, vector<32x128xf32>, vector<2x128xf32> -> vector<2x128xf32>
    %37 = arith.addf %35, %36 : vector<2x128xf32>
    %38 = arith.negf %37 : vector<2x128xf32>
    %39 = math.exp %38 : vector<2x128xf32>
    %cst_32 = arith.constant 1.000000e+00 : f32
    %40 = vector.broadcast %cst_32 : f32 to vector<2x128xf32>
    %41 = arith.addf %40, %39 : vector<2x128xf32>
    %42 = arith.divf %40, %41 : vector<2x128xf32>
    %43 = math.tanh %37 : vector<2x128xf32>
    %44 = vector.extract_strided_slice %42 {offsets = [0, 0], sizes = [2, 32], strides = [1, 1]} : vector<2x128xf32> to vector<2x32xf32>
    %45 = vector.extract_strided_slice %42 {offsets = [0, 32], sizes = [2, 32], strides = [1, 1]} : vector<2x128xf32> to vector<2x32xf32>
    %46 = vector.extract_strided_slice %43 {offsets = [0, 64], sizes = [2, 32], strides = [1, 1]} : vector<2x128xf32> to vector<2x32xf32>
    %47 = vector.extract_strided_slice %42 {offsets = [0, 96], sizes = [2, 32], strides = [1, 1]} : vector<2x128xf32> to vector<2x32xf32>
    %48 = arith.mulf %45, %30 : vector<2x32xf32>
    %49 = arith.mulf %44, %46 : vector<2x32xf32>
    %50 = arith.addf %48, %49 : vector<2x32xf32>
    %51 = math.tanh %50 : vector<2x32xf32>
    %52 = arith.mulf %47, %51 : vector<2x32xf32>
    %53 = vector.extract_strided_slice %34 {offsets = [2, 0], sizes = [2, 128], strides = [1, 1]} : vector<16x128xf32> to vector<2x128xf32>
    %cst_33 = arith.constant dense<0.000000e+00> : vector<2x128xf32>
    %54 = tpu.matmul %52, %25, %cst_33 {dimension_numbers = #tpu.dot_dimension_numbers<[1], [0], [0], [1], [0, 0, 1, 1], [], []>} : vector<2x32xf32>, vector<32x128xf32>, vector<2x128xf32> -> vector<2x128xf32>
    %55 = arith.addf %53, %54 : vector<2x128xf32>
    %56 = arith.negf %55 : vector<2x128xf32>
    %57 = math.exp %56 : vector<2x128xf32>
    %cst_34 = arith.constant 1.000000e+00 : f32
    %58 = vector.broadcast %cst_34 : f32 to vector<2x128xf32>
    %59 = arith.addf %58, %57 : vector<2x128xf32>
    %60 = arith.divf %58, %59 : vector<2x128xf32>
    %61 = math.tanh %55 : vector<2x128xf32>
    %62 = vector.extract_strided_slice %60 {offsets = [0, 0], sizes = [2, 32], strides = [1, 1]} : vector<2x128xf32> to vector<2x32xf32>
    %63 = vector.extract_strided_slice %60 {offsets = [0, 32], sizes = [2, 32], strides = [1, 1]} : vector<2x128xf32> to vector<2x32xf32>
    %64 = vector.extract_strided_slice %61 {offsets = [0, 64], sizes = [2, 32], strides = [1, 1]} : vector<2x128xf32> to vector<2x32xf32>
    %65 = vector.extract_strided_slice %60 {offsets = [0, 96], sizes = [2, 32], strides = [1, 1]} : vector<2x128xf32> to vector<2x32xf32>
    %66 = arith.mulf %63, %50 : vector<2x32xf32>
    %67 = arith.mulf %62, %64 : vector<2x32xf32>
    %68 = arith.addf %66, %67 : vector<2x32xf32>
    %69 = math.tanh %68 : vector<2x32xf32>
    %70 = arith.mulf %65, %69 : vector<2x32xf32>
    %71 = vector.extract_strided_slice %34 {offsets = [4, 0], sizes = [2, 128], strides = [1, 1]} : vector<16x128xf32> to vector<2x128xf32>
    %cst_35 = arith.constant dense<0.000000e+00> : vector<2x128xf32>
    %72 = tpu.matmul %70, %25, %cst_35 {dimension_numbers = #tpu.dot_dimension_numbers<[1], [0], [0], [1], [0, 0, 1, 1], [], []>} : vector<2x32xf32>, vector<32x128xf32>, vector<2x128xf32> -> vector<2x128xf32>
    %73 = arith.addf %71, %72 : vector<2x128xf32>
    %74 = arith.negf %73 : vector<2x128xf32>
    %75 = math.exp %74 : vector<2x128xf32>
    %cst_36 = arith.constant 1.000000e+00 : f32
    %76 = vector.broadcast %cst_36 : f32 to vector<2x128xf32>
    %77 = arith.addf %76, %75 : vector<2x128xf32>
    %78 = arith.divf %76, %77 : vector<2x128xf32>
    %79 = math.tanh %73 : vector<2x128xf32>
    %80 = vector.extract_strided_slice %78 {offsets = [0, 0], sizes = [2, 32], strides = [1, 1]} : vector<2x128xf32> to vector<2x32xf32>
    %81 = vector.extract_strided_slice %78 {offsets = [0, 32], sizes = [2, 32], strides = [1, 1]} : vector<2x128xf32> to vector<2x32xf32>
    %82 = vector.extract_strided_slice %79 {offsets = [0, 64], sizes = [2, 32], strides = [1, 1]} : vector<2x128xf32> to vector<2x32xf32>
    %83 = vector.extract_strided_slice %78 {offsets = [0, 96], sizes = [2, 32], strides = [1, 1]} : vector<2x128xf32> to vector<2x32xf32>
    %84 = arith.mulf %81, %68 : vector<2x32xf32>
    %85 = arith.mulf %80, %82 : vector<2x32xf32>
    %86 = arith.addf %84, %85 : vector<2x32xf32>
    %87 = math.tanh %86 : vector<2x32xf32>
    %88 = arith.mulf %83, %87 : vector<2x32xf32>
    %89 = vector.extract_strided_slice %34 {offsets = [6, 0], sizes = [2, 128], strides = [1, 1]} : vector<16x128xf32> to vector<2x128xf32>
    %cst_37 = arith.constant dense<0.000000e+00> : vector<2x128xf32>
    %90 = tpu.matmul %88, %25, %cst_37 {dimension_numbers = #tpu.dot_dimension_numbers<[1], [0], [0], [1], [0, 0, 1, 1], [], []>} : vector<2x32xf32>, vector<32x128xf32>, vector<2x128xf32> -> vector<2x128xf32>
    %91 = arith.addf %89, %90 : vector<2x128xf32>
    %92 = arith.negf %91 : vector<2x128xf32>
    %93 = math.exp %92 : vector<2x128xf32>
    %cst_38 = arith.constant 1.000000e+00 : f32
    %94 = vector.broadcast %cst_38 : f32 to vector<2x128xf32>
    %95 = arith.addf %94, %93 : vector<2x128xf32>
    %96 = arith.divf %94, %95 : vector<2x128xf32>
    %97 = math.tanh %91 : vector<2x128xf32>
    %98 = vector.extract_strided_slice %96 {offsets = [0, 0], sizes = [2, 32], strides = [1, 1]} : vector<2x128xf32> to vector<2x32xf32>
    %99 = vector.extract_strided_slice %96 {offsets = [0, 32], sizes = [2, 32], strides = [1, 1]} : vector<2x128xf32> to vector<2x32xf32>
    %100 = vector.extract_strided_slice %97 {offsets = [0, 64], sizes = [2, 32], strides = [1, 1]} : vector<2x128xf32> to vector<2x32xf32>
    %101 = vector.extract_strided_slice %96 {offsets = [0, 96], sizes = [2, 32], strides = [1, 1]} : vector<2x128xf32> to vector<2x32xf32>
    %102 = arith.mulf %99, %86 : vector<2x32xf32>
    %103 = arith.mulf %98, %100 : vector<2x32xf32>
    %104 = arith.addf %102, %103 : vector<2x32xf32>
    %105 = math.tanh %104 : vector<2x32xf32>
    %106 = arith.mulf %101, %105 : vector<2x32xf32>
    %107 = vector.extract_strided_slice %34 {offsets = [8, 0], sizes = [2, 128], strides = [1, 1]} : vector<16x128xf32> to vector<2x128xf32>
    %cst_39 = arith.constant dense<0.000000e+00> : vector<2x128xf32>
    %108 = tpu.matmul %106, %25, %cst_39 {dimension_numbers = #tpu.dot_dimension_numbers<[1], [0], [0], [1], [0, 0, 1, 1], [], []>} : vector<2x32xf32>, vector<32x128xf32>, vector<2x128xf32> -> vector<2x128xf32>
    %109 = arith.addf %107, %108 : vector<2x128xf32>
    %110 = arith.negf %109 : vector<2x128xf32>
    %111 = math.exp %110 : vector<2x128xf32>
    %cst_40 = arith.constant 1.000000e+00 : f32
    %112 = vector.broadcast %cst_40 : f32 to vector<2x128xf32>
    %113 = arith.addf %112, %111 : vector<2x128xf32>
    %114 = arith.divf %112, %113 : vector<2x128xf32>
    %115 = math.tanh %109 : vector<2x128xf32>
    %116 = vector.extract_strided_slice %114 {offsets = [0, 0], sizes = [2, 32], strides = [1, 1]} : vector<2x128xf32> to vector<2x32xf32>
    %117 = vector.extract_strided_slice %114 {offsets = [0, 32], sizes = [2, 32], strides = [1, 1]} : vector<2x128xf32> to vector<2x32xf32>
    %118 = vector.extract_strided_slice %115 {offsets = [0, 64], sizes = [2, 32], strides = [1, 1]} : vector<2x128xf32> to vector<2x32xf32>
    %119 = vector.extract_strided_slice %114 {offsets = [0, 96], sizes = [2, 32], strides = [1, 1]} : vector<2x128xf32> to vector<2x32xf32>
    %120 = arith.mulf %117, %104 : vector<2x32xf32>
    %121 = arith.mulf %116, %118 : vector<2x32xf32>
    %122 = arith.addf %120, %121 : vector<2x32xf32>
    %123 = math.tanh %122 : vector<2x32xf32>
    %124 = arith.mulf %119, %123 : vector<2x32xf32>
    %125 = vector.extract_strided_slice %34 {offsets = [10, 0], sizes = [2, 128], strides = [1, 1]} : vector<16x128xf32> to vector<2x128xf32>
    %cst_41 = arith.constant dense<0.000000e+00> : vector<2x128xf32>
    %126 = tpu.matmul %124, %25, %cst_41 {dimension_numbers = #tpu.dot_dimension_numbers<[1], [0], [0], [1], [0, 0, 1, 1], [], []>} : vector<2x32xf32>, vector<32x128xf32>, vector<2x128xf32> -> vector<2x128xf32>
    %127 = arith.addf %125, %126 : vector<2x128xf32>
    %128 = arith.negf %127 : vector<2x128xf32>
    %129 = math.exp %128 : vector<2x128xf32>
    %cst_42 = arith.constant 1.000000e+00 : f32
    %130 = vector.broadcast %cst_42 : f32 to vector<2x128xf32>
    %131 = arith.addf %130, %129 : vector<2x128xf32>
    %132 = arith.divf %130, %131 : vector<2x128xf32>
    %133 = math.tanh %127 : vector<2x128xf32>
    %134 = vector.extract_strided_slice %132 {offsets = [0, 0], sizes = [2, 32], strides = [1, 1]} : vector<2x128xf32> to vector<2x32xf32>
    %135 = vector.extract_strided_slice %132 {offsets = [0, 32], sizes = [2, 32], strides = [1, 1]} : vector<2x128xf32> to vector<2x32xf32>
    %136 = vector.extract_strided_slice %133 {offsets = [0, 64], sizes = [2, 32], strides = [1, 1]} : vector<2x128xf32> to vector<2x32xf32>
    %137 = vector.extract_strided_slice %132 {offsets = [0, 96], sizes = [2, 32], strides = [1, 1]} : vector<2x128xf32> to vector<2x32xf32>
    %138 = arith.mulf %135, %122 : vector<2x32xf32>
    %139 = arith.mulf %134, %136 : vector<2x32xf32>
    %140 = arith.addf %138, %139 : vector<2x32xf32>
    %141 = math.tanh %140 : vector<2x32xf32>
    %142 = arith.mulf %137, %141 : vector<2x32xf32>
    %143 = vector.extract_strided_slice %34 {offsets = [12, 0], sizes = [2, 128], strides = [1, 1]} : vector<16x128xf32> to vector<2x128xf32>
    %cst_43 = arith.constant dense<0.000000e+00> : vector<2x128xf32>
    %144 = tpu.matmul %142, %25, %cst_43 {dimension_numbers = #tpu.dot_dimension_numbers<[1], [0], [0], [1], [0, 0, 1, 1], [], []>} : vector<2x32xf32>, vector<32x128xf32>, vector<2x128xf32> -> vector<2x128xf32>
    %145 = arith.addf %143, %144 : vector<2x128xf32>
    %146 = arith.negf %145 : vector<2x128xf32>
    %147 = math.exp %146 : vector<2x128xf32>
    %cst_44 = arith.constant 1.000000e+00 : f32
    %148 = vector.broadcast %cst_44 : f32 to vector<2x128xf32>
    %149 = arith.addf %148, %147 : vector<2x128xf32>
    %150 = arith.divf %148, %149 : vector<2x128xf32>
    %151 = math.tanh %145 : vector<2x128xf32>
    %152 = vector.extract_strided_slice %150 {offsets = [0, 0], sizes = [2, 32], strides = [1, 1]} : vector<2x128xf32> to vector<2x32xf32>
    %153 = vector.extract_strided_slice %150 {offsets = [0, 32], sizes = [2, 32], strides = [1, 1]} : vector<2x128xf32> to vector<2x32xf32>
    %154 = vector.extract_strided_slice %151 {offsets = [0, 64], sizes = [2, 32], strides = [1, 1]} : vector<2x128xf32> to vector<2x32xf32>
    %155 = vector.extract_strided_slice %150 {offsets = [0, 96], sizes = [2, 32], strides = [1, 1]} : vector<2x128xf32> to vector<2x32xf32>
    %156 = arith.mulf %153, %140 : vector<2x32xf32>
    %157 = arith.mulf %152, %154 : vector<2x32xf32>
    %158 = arith.addf %156, %157 : vector<2x32xf32>
    %159 = math.tanh %158 : vector<2x32xf32>
    %160 = arith.mulf %155, %159 : vector<2x32xf32>
    %161 = vector.extract_strided_slice %34 {offsets = [14, 0], sizes = [2, 128], strides = [1, 1]} : vector<16x128xf32> to vector<2x128xf32>
    %cst_45 = arith.constant dense<0.000000e+00> : vector<2x128xf32>
    %162 = tpu.matmul %160, %25, %cst_45 {dimension_numbers = #tpu.dot_dimension_numbers<[1], [0], [0], [1], [0, 0, 1, 1], [], []>} : vector<2x32xf32>, vector<32x128xf32>, vector<2x128xf32> -> vector<2x128xf32>
    %163 = arith.addf %161, %162 : vector<2x128xf32>
    %164 = arith.negf %163 : vector<2x128xf32>
    %165 = math.exp %164 : vector<2x128xf32>
    %cst_46 = arith.constant 1.000000e+00 : f32
    %166 = vector.broadcast %cst_46 : f32 to vector<2x128xf32>
    %167 = arith.addf %166, %165 : vector<2x128xf32>
    %168 = arith.divf %166, %167 : vector<2x128xf32>
    %169 = math.tanh %163 : vector<2x128xf32>
    %170 = vector.extract_strided_slice %168 {offsets = [0, 0], sizes = [2, 32], strides = [1, 1]} : vector<2x128xf32> to vector<2x32xf32>
    %171 = vector.extract_strided_slice %168 {offsets = [0, 32], sizes = [2, 32], strides = [1, 1]} : vector<2x128xf32> to vector<2x32xf32>
    %172 = vector.extract_strided_slice %169 {offsets = [0, 64], sizes = [2, 32], strides = [1, 1]} : vector<2x128xf32> to vector<2x32xf32>
    %173 = vector.extract_strided_slice %168 {offsets = [0, 96], sizes = [2, 32], strides = [1, 1]} : vector<2x128xf32> to vector<2x32xf32>
    %174 = arith.mulf %171, %158 : vector<2x32xf32>
    %175 = arith.mulf %170, %172 : vector<2x32xf32>
    %176 = arith.addf %174, %175 : vector<2x32xf32>
    %177 = math.tanh %176 : vector<2x32xf32>
    %178 = arith.mulf %173, %177 : vector<2x32xf32>
    %179 = tpu.concatenate %52, %70, %88, %106, %124, %142, %160, %178 in 0 : vector<2x32xf32>, vector<2x32xf32>, vector<2x32xf32>, vector<2x32xf32>, vector<2x32xf32>, vector<2x32xf32>, vector<2x32xf32>, vector<2x32xf32> -> vector<16x32xf32>
    %cst_47 = arith.constant dense<0.000000e+00> : vector<16x128xf32>
    %180 = tpu.matmul %179, %27, %cst_47 {dimension_numbers = #tpu.dot_dimension_numbers<[1], [0], [0], [1], [0, 0, 1, 1], [], []>} : vector<16x32xf32>, vector<32x128xf32>, vector<16x128xf32> -> vector<16x128xf32>
    %181 = vector.broadcast %29 : vector<1x128xf32> to vector<16x128xf32>
    %182 = arith.addf %180, %181 : vector<16x128xf32>
    %183 = vector.extract_strided_slice %182 {offsets = [0, 0], sizes = [2, 128], strides = [1, 1]} : vector<16x128xf32> to vector<2x128xf32>
    %cst_48 = arith.constant dense<0.000000e+00> : vector<2x128xf32>
    %184 = tpu.matmul %30, %28, %cst_48 {dimension_numbers = #tpu.dot_dimension_numbers<[1], [0], [0], [1], [0, 0, 1, 1], [], []>} : vector<2x32xf32>, vector<32x128xf32>, vector<2x128xf32> -> vector<2x128xf32>
    %185 = arith.addf %183, %184 : vector<2x128xf32>
    %186 = arith.negf %185 : vector<2x128xf32>
    %187 = math.exp %186 : vector<2x128xf32>
    %cst_49 = arith.constant 1.000000e+00 : f32
    %188 = vector.broadcast %cst_49 : f32 to vector<2x128xf32>
    %189 = arith.addf %188, %187 : vector<2x128xf32>
    %190 = arith.divf %188, %189 : vector<2x128xf32>
    %191 = math.tanh %185 : vector<2x128xf32>
    %192 = vector.extract_strided_slice %190 {offsets = [0, 0], sizes = [2, 32], strides = [1, 1]} : vector<2x128xf32> to vector<2x32xf32>
    %193 = vector.extract_strided_slice %190 {offsets = [0, 32], sizes = [2, 32], strides = [1, 1]} : vector<2x128xf32> to vector<2x32xf32>
    %194 = vector.extract_strided_slice %191 {offsets = [0, 64], sizes = [2, 32], strides = [1, 1]} : vector<2x128xf32> to vector<2x32xf32>
    %195 = vector.extract_strided_slice %190 {offsets = [0, 96], sizes = [2, 32], strides = [1, 1]} : vector<2x128xf32> to vector<2x32xf32>
    %196 = arith.mulf %193, %30 : vector<2x32xf32>
    %197 = arith.mulf %192, %194 : vector<2x32xf32>
    %198 = arith.addf %196, %197 : vector<2x32xf32>
    %199 = math.tanh %198 : vector<2x32xf32>
    %200 = arith.mulf %195, %199 : vector<2x32xf32>
    %201 = vector.extract_strided_slice %182 {offsets = [2, 0], sizes = [2, 128], strides = [1, 1]} : vector<16x128xf32> to vector<2x128xf32>
    %cst_50 = arith.constant dense<0.000000e+00> : vector<2x128xf32>
    %202 = tpu.matmul %200, %28, %cst_50 {dimension_numbers = #tpu.dot_dimension_numbers<[1], [0], [0], [1], [0, 0, 1, 1], [], []>} : vector<2x32xf32>, vector<32x128xf32>, vector<2x128xf32> -> vector<2x128xf32>
    %203 = arith.addf %201, %202 : vector<2x128xf32>
    %204 = arith.negf %203 : vector<2x128xf32>
    %205 = math.exp %204 : vector<2x128xf32>
    %cst_51 = arith.constant 1.000000e+00 : f32
    %206 = vector.broadcast %cst_51 : f32 to vector<2x128xf32>
    %207 = arith.addf %206, %205 : vector<2x128xf32>
    %208 = arith.divf %206, %207 : vector<2x128xf32>
    %209 = math.tanh %203 : vector<2x128xf32>
    %210 = vector.extract_strided_slice %208 {offsets = [0, 0], sizes = [2, 32], strides = [1, 1]} : vector<2x128xf32> to vector<2x32xf32>
    %211 = vector.extract_strided_slice %208 {offsets = [0, 32], sizes = [2, 32], strides = [1, 1]} : vector<2x128xf32> to vector<2x32xf32>
    %212 = vector.extract_strided_slice %209 {offsets = [0, 64], sizes = [2, 32], strides = [1, 1]} : vector<2x128xf32> to vector<2x32xf32>
    %213 = vector.extract_strided_slice %208 {offsets = [0, 96], sizes = [2, 32], strides = [1, 1]} : vector<2x128xf32> to vector<2x32xf32>
    %214 = arith.mulf %211, %198 : vector<2x32xf32>
    %215 = arith.mulf %210, %212 : vector<2x32xf32>
    %216 = arith.addf %214, %215 : vector<2x32xf32>
    %217 = math.tanh %216 : vector<2x32xf32>
    %218 = arith.mulf %213, %217 : vector<2x32xf32>
    %219 = vector.extract_strided_slice %182 {offsets = [4, 0], sizes = [2, 128], strides = [1, 1]} : vector<16x128xf32> to vector<2x128xf32>
    %cst_52 = arith.constant dense<0.000000e+00> : vector<2x128xf32>
    %220 = tpu.matmul %218, %28, %cst_52 {dimension_numbers = #tpu.dot_dimension_numbers<[1], [0], [0], [1], [0, 0, 1, 1], [], []>} : vector<2x32xf32>, vector<32x128xf32>, vector<2x128xf32> -> vector<2x128xf32>
    %221 = arith.addf %219, %220 : vector<2x128xf32>
    %222 = arith.negf %221 : vector<2x128xf32>
    %223 = math.exp %222 : vector<2x128xf32>
    %cst_53 = arith.constant 1.000000e+00 : f32
    %224 = vector.broadcast %cst_53 : f32 to vector<2x128xf32>
    %225 = arith.addf %224, %223 : vector<2x128xf32>
    %226 = arith.divf %224, %225 : vector<2x128xf32>
    %227 = math.tanh %221 : vector<2x128xf32>
    %228 = vector.extract_strided_slice %226 {offsets = [0, 0], sizes = [2, 32], strides = [1, 1]} : vector<2x128xf32> to vector<2x32xf32>
    %229 = vector.extract_strided_slice %226 {offsets = [0, 32], sizes = [2, 32], strides = [1, 1]} : vector<2x128xf32> to vector<2x32xf32>
    %230 = vector.extract_strided_slice %227 {offsets = [0, 64], sizes = [2, 32], strides = [1, 1]} : vector<2x128xf32> to vector<2x32xf32>
    %231 = vector.extract_strided_slice %226 {offsets = [0, 96], sizes = [2, 32], strides = [1, 1]} : vector<2x128xf32> to vector<2x32xf32>
    %232 = arith.mulf %229, %216 : vector<2x32xf32>
    %233 = arith.mulf %228, %230 : vector<2x32xf32>
    %234 = arith.addf %232, %233 : vector<2x32xf32>
    %235 = math.tanh %234 : vector<2x32xf32>
    %236 = arith.mulf %231, %235 : vector<2x32xf32>
    %237 = vector.extract_strided_slice %182 {offsets = [6, 0], sizes = [2, 128], strides = [1, 1]} : vector<16x128xf32> to vector<2x128xf32>
    %cst_54 = arith.constant dense<0.000000e+00> : vector<2x128xf32>
    %238 = tpu.matmul %236, %28, %cst_54 {dimension_numbers = #tpu.dot_dimension_numbers<[1], [0], [0], [1], [0, 0, 1, 1], [], []>} : vector<2x32xf32>, vector<32x128xf32>, vector<2x128xf32> -> vector<2x128xf32>
    %239 = arith.addf %237, %238 : vector<2x128xf32>
    %240 = arith.negf %239 : vector<2x128xf32>
    %241 = math.exp %240 : vector<2x128xf32>
    %cst_55 = arith.constant 1.000000e+00 : f32
    %242 = vector.broadcast %cst_55 : f32 to vector<2x128xf32>
    %243 = arith.addf %242, %241 : vector<2x128xf32>
    %244 = arith.divf %242, %243 : vector<2x128xf32>
    %245 = math.tanh %239 : vector<2x128xf32>
    %246 = vector.extract_strided_slice %244 {offsets = [0, 0], sizes = [2, 32], strides = [1, 1]} : vector<2x128xf32> to vector<2x32xf32>
    %247 = vector.extract_strided_slice %244 {offsets = [0, 32], sizes = [2, 32], strides = [1, 1]} : vector<2x128xf32> to vector<2x32xf32>
    %248 = vector.extract_strided_slice %245 {offsets = [0, 64], sizes = [2, 32], strides = [1, 1]} : vector<2x128xf32> to vector<2x32xf32>
    %249 = vector.extract_strided_slice %244 {offsets = [0, 96], sizes = [2, 32], strides = [1, 1]} : vector<2x128xf32> to vector<2x32xf32>
    %250 = arith.mulf %247, %234 : vector<2x32xf32>
    %251 = arith.mulf %246, %248 : vector<2x32xf32>
    %252 = arith.addf %250, %251 : vector<2x32xf32>
    %253 = math.tanh %252 : vector<2x32xf32>
    %254 = arith.mulf %249, %253 : vector<2x32xf32>
    %255 = vector.extract_strided_slice %182 {offsets = [8, 0], sizes = [2, 128], strides = [1, 1]} : vector<16x128xf32> to vector<2x128xf32>
    %cst_56 = arith.constant dense<0.000000e+00> : vector<2x128xf32>
    %256 = tpu.matmul %254, %28, %cst_56 {dimension_numbers = #tpu.dot_dimension_numbers<[1], [0], [0], [1], [0, 0, 1, 1], [], []>} : vector<2x32xf32>, vector<32x128xf32>, vector<2x128xf32> -> vector<2x128xf32>
    %257 = arith.addf %255, %256 : vector<2x128xf32>
    %258 = arith.negf %257 : vector<2x128xf32>
    %259 = math.exp %258 : vector<2x128xf32>
    %cst_57 = arith.constant 1.000000e+00 : f32
    %260 = vector.broadcast %cst_57 : f32 to vector<2x128xf32>
    %261 = arith.addf %260, %259 : vector<2x128xf32>
    %262 = arith.divf %260, %261 : vector<2x128xf32>
    %263 = math.tanh %257 : vector<2x128xf32>
    %264 = vector.extract_strided_slice %262 {offsets = [0, 0], sizes = [2, 32], strides = [1, 1]} : vector<2x128xf32> to vector<2x32xf32>
    %265 = vector.extract_strided_slice %262 {offsets = [0, 32], sizes = [2, 32], strides = [1, 1]} : vector<2x128xf32> to vector<2x32xf32>
    %266 = vector.extract_strided_slice %263 {offsets = [0, 64], sizes = [2, 32], strides = [1, 1]} : vector<2x128xf32> to vector<2x32xf32>
    %267 = vector.extract_strided_slice %262 {offsets = [0, 96], sizes = [2, 32], strides = [1, 1]} : vector<2x128xf32> to vector<2x32xf32>
    %268 = arith.mulf %265, %252 : vector<2x32xf32>
    %269 = arith.mulf %264, %266 : vector<2x32xf32>
    %270 = arith.addf %268, %269 : vector<2x32xf32>
    %271 = math.tanh %270 : vector<2x32xf32>
    %272 = arith.mulf %267, %271 : vector<2x32xf32>
    %273 = vector.extract_strided_slice %182 {offsets = [10, 0], sizes = [2, 128], strides = [1, 1]} : vector<16x128xf32> to vector<2x128xf32>
    %cst_58 = arith.constant dense<0.000000e+00> : vector<2x128xf32>
    %274 = tpu.matmul %272, %28, %cst_58 {dimension_numbers = #tpu.dot_dimension_numbers<[1], [0], [0], [1], [0, 0, 1, 1], [], []>} : vector<2x32xf32>, vector<32x128xf32>, vector<2x128xf32> -> vector<2x128xf32>
    %275 = arith.addf %273, %274 : vector<2x128xf32>
    %276 = arith.negf %275 : vector<2x128xf32>
    %277 = math.exp %276 : vector<2x128xf32>
    %cst_59 = arith.constant 1.000000e+00 : f32
    %278 = vector.broadcast %cst_59 : f32 to vector<2x128xf32>
    %279 = arith.addf %278, %277 : vector<2x128xf32>
    %280 = arith.divf %278, %279 : vector<2x128xf32>
    %281 = math.tanh %275 : vector<2x128xf32>
    %282 = vector.extract_strided_slice %280 {offsets = [0, 0], sizes = [2, 32], strides = [1, 1]} : vector<2x128xf32> to vector<2x32xf32>
    %283 = vector.extract_strided_slice %280 {offsets = [0, 32], sizes = [2, 32], strides = [1, 1]} : vector<2x128xf32> to vector<2x32xf32>
    %284 = vector.extract_strided_slice %281 {offsets = [0, 64], sizes = [2, 32], strides = [1, 1]} : vector<2x128xf32> to vector<2x32xf32>
    %285 = vector.extract_strided_slice %280 {offsets = [0, 96], sizes = [2, 32], strides = [1, 1]} : vector<2x128xf32> to vector<2x32xf32>
    %286 = arith.mulf %283, %270 : vector<2x32xf32>
    %287 = arith.mulf %282, %284 : vector<2x32xf32>
    %288 = arith.addf %286, %287 : vector<2x32xf32>
    %289 = math.tanh %288 : vector<2x32xf32>
    %290 = arith.mulf %285, %289 : vector<2x32xf32>
    %291 = vector.extract_strided_slice %182 {offsets = [12, 0], sizes = [2, 128], strides = [1, 1]} : vector<16x128xf32> to vector<2x128xf32>
    %cst_60 = arith.constant dense<0.000000e+00> : vector<2x128xf32>
    %292 = tpu.matmul %290, %28, %cst_60 {dimension_numbers = #tpu.dot_dimension_numbers<[1], [0], [0], [1], [0, 0, 1, 1], [], []>} : vector<2x32xf32>, vector<32x128xf32>, vector<2x128xf32> -> vector<2x128xf32>
    %293 = arith.addf %291, %292 : vector<2x128xf32>
    %294 = arith.negf %293 : vector<2x128xf32>
    %295 = math.exp %294 : vector<2x128xf32>
    %cst_61 = arith.constant 1.000000e+00 : f32
    %296 = vector.broadcast %cst_61 : f32 to vector<2x128xf32>
    %297 = arith.addf %296, %295 : vector<2x128xf32>
    %298 = arith.divf %296, %297 : vector<2x128xf32>
    %299 = math.tanh %293 : vector<2x128xf32>
    %300 = vector.extract_strided_slice %298 {offsets = [0, 0], sizes = [2, 32], strides = [1, 1]} : vector<2x128xf32> to vector<2x32xf32>
    %301 = vector.extract_strided_slice %298 {offsets = [0, 32], sizes = [2, 32], strides = [1, 1]} : vector<2x128xf32> to vector<2x32xf32>
    %302 = vector.extract_strided_slice %299 {offsets = [0, 64], sizes = [2, 32], strides = [1, 1]} : vector<2x128xf32> to vector<2x32xf32>
    %303 = vector.extract_strided_slice %298 {offsets = [0, 96], sizes = [2, 32], strides = [1, 1]} : vector<2x128xf32> to vector<2x32xf32>
    %304 = arith.mulf %301, %288 : vector<2x32xf32>
    %305 = arith.mulf %300, %302 : vector<2x32xf32>
    %306 = arith.addf %304, %305 : vector<2x32xf32>
    %307 = math.tanh %306 : vector<2x32xf32>
    %308 = arith.mulf %303, %307 : vector<2x32xf32>
    %309 = vector.extract_strided_slice %182 {offsets = [14, 0], sizes = [2, 128], strides = [1, 1]} : vector<16x128xf32> to vector<2x128xf32>
    %cst_62 = arith.constant dense<0.000000e+00> : vector<2x128xf32>
    %310 = tpu.matmul %308, %28, %cst_62 {dimension_numbers = #tpu.dot_dimension_numbers<[1], [0], [0], [1], [0, 0, 1, 1], [], []>} : vector<2x32xf32>, vector<32x128xf32>, vector<2x128xf32> -> vector<2x128xf32>
    %311 = arith.addf %309, %310 : vector<2x128xf32>
    %312 = arith.negf %311 : vector<2x128xf32>
    %313 = math.exp %312 : vector<2x128xf32>
    %cst_63 = arith.constant 1.000000e+00 : f32
    %314 = vector.broadcast %cst_63 : f32 to vector<2x128xf32>
    %315 = arith.addf %314, %313 : vector<2x128xf32>
    %316 = arith.divf %314, %315 : vector<2x128xf32>
    %317 = math.tanh %311 : vector<2x128xf32>
    %318 = vector.extract_strided_slice %316 {offsets = [0, 0], sizes = [2, 32], strides = [1, 1]} : vector<2x128xf32> to vector<2x32xf32>
    %319 = vector.extract_strided_slice %316 {offsets = [0, 32], sizes = [2, 32], strides = [1, 1]} : vector<2x128xf32> to vector<2x32xf32>
    %320 = vector.extract_strided_slice %317 {offsets = [0, 64], sizes = [2, 32], strides = [1, 1]} : vector<2x128xf32> to vector<2x32xf32>
    %321 = vector.extract_strided_slice %316 {offsets = [0, 96], sizes = [2, 32], strides = [1, 1]} : vector<2x128xf32> to vector<2x32xf32>
    %322 = arith.mulf %319, %306 : vector<2x32xf32>
    %323 = arith.mulf %318, %320 : vector<2x32xf32>
    %324 = arith.addf %322, %323 : vector<2x32xf32>
    %325 = math.tanh %324 : vector<2x32xf32>
    %326 = arith.mulf %321, %325 : vector<2x32xf32>
    %cst_64 = arith.constant dense<0.000000e+00> : vector<2x128xf32>
    %327 = tpu.matmul %23, %24, %cst_64 {dimension_numbers = #tpu.dot_dimension_numbers<[1], [0], [0], [1], [0, 0, 1, 1], [], []>} : vector<2x32xf32>, vector<32x128xf32>, vector<2x128xf32> -> vector<2x128xf32>
    %328 = vector.broadcast %26 : vector<1x128xf32> to vector<2x128xf32>
    %329 = arith.addf %327, %328 : vector<2x128xf32>
    %cst_65 = arith.constant dense<0.000000e+00> : vector<2x128xf32>
    %330 = tpu.matmul %178, %25, %cst_65 {dimension_numbers = #tpu.dot_dimension_numbers<[1], [0], [0], [1], [0, 0, 1, 1], [], []>} : vector<2x32xf32>, vector<32x128xf32>, vector<2x128xf32> -> vector<2x128xf32>
    %331 = arith.addf %329, %330 : vector<2x128xf32>
    %332 = arith.negf %331 : vector<2x128xf32>
    %333 = math.exp %332 : vector<2x128xf32>
    %cst_66 = arith.constant 1.000000e+00 : f32
    %334 = vector.broadcast %cst_66 : f32 to vector<2x128xf32>
    %335 = arith.addf %334, %333 : vector<2x128xf32>
    %336 = arith.divf %334, %335 : vector<2x128xf32>
    %337 = math.tanh %331 : vector<2x128xf32>
    %338 = vector.extract_strided_slice %336 {offsets = [0, 0], sizes = [2, 32], strides = [1, 1]} : vector<2x128xf32> to vector<2x32xf32>
    %339 = vector.extract_strided_slice %336 {offsets = [0, 32], sizes = [2, 32], strides = [1, 1]} : vector<2x128xf32> to vector<2x32xf32>
    %340 = vector.extract_strided_slice %337 {offsets = [0, 64], sizes = [2, 32], strides = [1, 1]} : vector<2x128xf32> to vector<2x32xf32>
    %341 = vector.extract_strided_slice %336 {offsets = [0, 96], sizes = [2, 32], strides = [1, 1]} : vector<2x128xf32> to vector<2x32xf32>
    %342 = arith.mulf %339, %176 : vector<2x32xf32>
    %343 = arith.mulf %338, %340 : vector<2x32xf32>
    %344 = arith.addf %342, %343 : vector<2x32xf32>
    %345 = math.tanh %344 : vector<2x32xf32>
    %346 = arith.mulf %341, %345 : vector<2x32xf32>
    %cst_67 = arith.constant dense<0.000000e+00> : vector<2x128xf32>
    %347 = tpu.matmul %346, %27, %cst_67 {dimension_numbers = #tpu.dot_dimension_numbers<[1], [0], [0], [1], [0, 0, 1, 1], [], []>} : vector<2x32xf32>, vector<32x128xf32>, vector<2x128xf32> -> vector<2x128xf32>
    %348 = vector.broadcast %29 : vector<1x128xf32> to vector<2x128xf32>
    %349 = arith.addf %347, %348 : vector<2x128xf32>
    %cst_68 = arith.constant dense<0.000000e+00> : vector<2x128xf32>
    %350 = tpu.matmul %326, %28, %cst_68 {dimension_numbers = #tpu.dot_dimension_numbers<[1], [0], [0], [1], [0, 0, 1, 1], [], []>} : vector<2x32xf32>, vector<32x128xf32>, vector<2x128xf32> -> vector<2x128xf32>
    %351 = arith.addf %349, %350 : vector<2x128xf32>
    %352 = arith.negf %351 : vector<2x128xf32>
    %353 = math.exp %352 : vector<2x128xf32>
    %cst_69 = arith.constant 1.000000e+00 : f32
    %354 = vector.broadcast %cst_69 : f32 to vector<2x128xf32>
    %355 = arith.addf %354, %353 : vector<2x128xf32>
    %356 = arith.divf %354, %355 : vector<2x128xf32>
    %357 = math.tanh %351 : vector<2x128xf32>
    %358 = vector.extract_strided_slice %356 {offsets = [0, 0], sizes = [2, 32], strides = [1, 1]} : vector<2x128xf32> to vector<2x32xf32>
    %359 = vector.extract_strided_slice %356 {offsets = [0, 32], sizes = [2, 32], strides = [1, 1]} : vector<2x128xf32> to vector<2x32xf32>
    %360 = vector.extract_strided_slice %357 {offsets = [0, 64], sizes = [2, 32], strides = [1, 1]} : vector<2x128xf32> to vector<2x32xf32>
    %361 = vector.extract_strided_slice %356 {offsets = [0, 96], sizes = [2, 32], strides = [1, 1]} : vector<2x128xf32> to vector<2x32xf32>
    %362 = arith.mulf %359, %324 : vector<2x32xf32>
    %363 = arith.mulf %358, %360 : vector<2x32xf32>
    %364 = arith.addf %362, %363 : vector<2x32xf32>
    %365 = math.tanh %364 : vector<2x32xf32>
    %366 = arith.mulf %361, %365 : vector<2x32xf32>
    %c0_70 = arith.constant 0 : index
    %c0_71 = arith.constant 0 : index
    %367 = vector.load %arg14[%c0_70, %c0_71] : memref<32x32xf32, #tpu.memory_space<vmem>>, vector<32x32xf32>
    %cst_72 = arith.constant dense<0.000000e+00> : vector<2x32xf32>
    %368 = tpu.matmul %366, %367, %cst_72 {dimension_numbers = #tpu.dot_dimension_numbers<[1], [0], [0], [1], [0, 0, 1, 1], [], []>} : vector<2x32xf32>, vector<32x32xf32>, vector<2x32xf32> -> vector<2x32xf32>
    %c0_73 = arith.constant 0 : index
    %c0_74 = arith.constant 0 : index
    %369 = vector.load %arg15[%c0_73, %c0_74] : memref<1x32xf32, #tpu.memory_space<vmem>>, vector<1x32xf32>
    %370 = vector.broadcast %369 : vector<1x32xf32> to vector<2x32xf32>
    %371 = arith.addf %368, %370 : vector<2x32xf32>
    %c0_75 = arith.constant 0 : index
    %c0_76 = arith.constant 0 : index
    %372 = vector.load %arg13[%c0_75, %c0_76] : memref<16x32xf32, #tpu.memory_space<vmem>>, vector<16x32xf32>
    %c0_77 = arith.constant 0 : index
    %c0_78 = arith.constant 0 : index
    %373 = vector.load %arg16[%c0_77, %c0_78] : memref<32x32xf32, #tpu.memory_space<vmem>>, vector<32x32xf32>
    %cst_79 = arith.constant dense<0.000000e+00> : vector<16x32xf32>
    %374 = tpu.matmul %372, %373, %cst_79 {dimension_numbers = #tpu.dot_dimension_numbers<[1], [0], [0], [1], [0, 0, 1, 1], [], []>} : vector<16x32xf32>, vector<32x32xf32>, vector<16x32xf32> -> vector<16x32xf32>
    %c0_80 = arith.constant 0 : index
    %c0_81 = arith.constant 0 : index
    %375 = vector.load %arg17[%c0_80, %c0_81] : memref<1x32xf32, #tpu.memory_space<vmem>>, vector<1x32xf32>
    %376 = vector.broadcast %375 : vector<1x32xf32> to vector<16x32xf32>
    %377 = arith.addf %374, %376 : vector<16x32xf32>
    %c0_82 = arith.constant 0 : index
    %c0_83 = arith.constant 0 : index
    %378 = vector.load %arg18[%c0_82, %c0_83] : memref<1x32xf32, #tpu.memory_space<vmem>>, vector<1x32xf32>
    %379 = vector.extract_strided_slice %377 {offsets = [0, 0], sizes = [8, 32], strides = [1, 1]} : vector<16x32xf32> to vector<8x32xf32>
    %380 = vector.extract_strided_slice %371 {offsets = [0, 0], sizes = [1, 32], strides = [1, 1]} : vector<2x32xf32> to vector<1x32xf32>
    %381 = vector.broadcast %380 : vector<1x32xf32> to vector<8x32xf32>
    %382 = arith.addf %379, %381 : vector<8x32xf32>
    %383 = math.tanh %382 : vector<8x32xf32>
    %384 = vector.broadcast %378 : vector<1x32xf32> to vector<8x32xf32>
    %385 = arith.mulf %383, %384 : vector<8x32xf32>
    %cst_84 = arith.constant dense<0.000000e+00> : vector<8xf32>
    %386 = vector.multi_reduction <add>, %385, %cst_84 [1] : vector<8x32xf32> to vector<8xf32>
    %387 = vector.shape_cast %386 : vector<8xf32> to vector<1x8xf32>
    %388 = vector.extract_strided_slice %377 {offsets = [8, 0], sizes = [8, 32], strides = [1, 1]} : vector<16x32xf32> to vector<8x32xf32>
    %389 = vector.extract_strided_slice %371 {offsets = [1, 0], sizes = [1, 32], strides = [1, 1]} : vector<2x32xf32> to vector<1x32xf32>
    %390 = vector.broadcast %389 : vector<1x32xf32> to vector<8x32xf32>
    %391 = arith.addf %388, %390 : vector<8x32xf32>
    %392 = math.tanh %391 : vector<8x32xf32>
    %393 = vector.broadcast %378 : vector<1x32xf32> to vector<8x32xf32>
    %394 = arith.mulf %392, %393 : vector<8x32xf32>
    %cst_85 = arith.constant dense<0.000000e+00> : vector<8xf32>
    %395 = vector.multi_reduction <add>, %394, %cst_85 [1] : vector<8x32xf32> to vector<8xf32>
    %396 = vector.shape_cast %395 : vector<8xf32> to vector<1x8xf32>
    %397 = tpu.concatenate %387, %396 in 0 : vector<1x8xf32>, vector<1x8xf32> -> vector<2x8xf32>
    %cst_86 = arith.constant 0.000000e+00 : f32
    %398 = vector.broadcast %cst_86 : f32 to vector<2x56xf32>
    %399 = tpu.concatenate %397, %366, %23, %398 in 1 : vector<2x8xf32>, vector<2x32xf32>, vector<2x32xf32>, vector<2x56xf32> -> vector<2x128xf32>
    %c0_87 = arith.constant 0 : index
    %c0_88 = arith.constant 0 : index
    %400 = vector.load %arg19[%c0_87, %c0_88] : memref<2x128xf32, #tpu.memory_space<vmem>>, vector<2x128xf32>
    tpu.vector_store %arg19[%c0_87, %c0_88], %399 {strides = array<i32>} : memref<2x128xf32, #tpu.memory_space<vmem>>, vector<2x128xf32>,
    return
  }
  func.func @transform_0(%arg0: i32) -> (i32, i32) {
    %c0_i32 = arith.constant 0 : i32
    %c0_i32_0 = arith.constant 0 : i32
    %c0_i32_1 = arith.constant 0 : i32
    return %c0_i32, %c0_i32_0 : i32, i32
  }
  func.func @transform_1(%arg0: i32) -> (i32, i32) {
    %c0_i32 = arith.constant 0 : i32
    %c0_i32_0 = arith.constant 0 : i32
    %c0_i32_1 = arith.constant 0 : i32
    return %c0_i32, %c0_i32_0 : i32, i32
  }
  func.func @transform_2(%arg0: i32) -> (i32, i32) {
    %c0_i32 = arith.constant 0 : i32
    %c0_i32_0 = arith.constant 0 : i32
    %c0_i32_1 = arith.constant 0 : i32
    return %c0_i32, %c0_i32_0 : i32, i32
  }
  func.func @transform_3(%arg0: i32) -> (i32, i32) {
    %c0_i32 = arith.constant 0 : i32
    %c0_i32_0 = arith.constant 0 : i32
    %c0_i32_1 = arith.constant 0 : i32
    return %c0_i32, %c0_i32_0 : i32, i32
  }
  func.func @transform_4(%arg0: i32) -> (i32, i32) {
    %c0_i32 = arith.constant 0 : i32
    %c0_i32_0 = arith.constant 0 : i32
    %c0_i32_1 = arith.constant 0 : i32
    return %c0_i32, %c0_i32_0 : i32, i32
  }
  func.func @transform_5(%arg0: i32) -> (i32, i32) {
    %c0_i32 = arith.constant 0 : i32
    %c0_i32_0 = arith.constant 0 : i32
    %c0_i32_1 = arith.constant 0 : i32
    return %c0_i32, %c0_i32_0 : i32, i32
  }
  func.func @transform_6(%arg0: i32) -> (i32, i32) {
    %c0_i32 = arith.constant 0 : i32
    %c0_i32_0 = arith.constant 0 : i32
    %c0_i32_1 = arith.constant 0 : i32
    return %c0_i32, %c0_i32_0 : i32, i32
  }
  func.func @transform_7(%arg0: i32) -> (i32, i32) {
    %c0_i32 = arith.constant 0 : i32
    %c0_i32_0 = arith.constant 0 : i32
    %c0_i32_1 = arith.constant 0 : i32
    return %c0_i32, %c0_i32_0 : i32, i32
  }
  func.func @transform_8(%arg0: i32) -> (i32, i32) {
    %c0_i32 = arith.constant 0 : i32
    %c0_i32_0 = arith.constant 0 : i32
    %c0_i32_1 = arith.constant 0 : i32
    return %c0_i32, %c0_i32_0 : i32, i32
  }
  func.func @transform_9(%arg0: i32) -> (i32, i32) {
    %c0_i32 = arith.constant 0 : i32
    %c0_i32_0 = arith.constant 0 : i32
    %c0_i32_1 = arith.constant 0 : i32
    return %c0_i32, %c0_i32_0 : i32, i32
  }
  func.func @transform_10(%arg0: i32) -> (i32, i32) {
    %c0_i32 = arith.constant 0 : i32
    %c0_i32_0 = arith.constant 0 : i32
    %c0_i32_1 = arith.constant 0 : i32
    return %c0_i32, %c0_i32_0 : i32, i32
  }
  func.func @transform_11(%arg0: i32) -> (i32, i32) {
    %c0_i32 = arith.constant 0 : i32
    %c0_i32_0 = arith.constant 0 : i32
    %c0_i32_1 = arith.constant 0 : i32
    return %c0_i32, %c0_i32_0 : i32, i32
  }
  func.func @transform_12(%arg0: i32) -> (i32, i32) {
    %c0_i32 = arith.constant 0 : i32
    %c0_i32_0 = arith.constant 0 : i32
    %c0_i32_1 = arith.constant 0 : i32
    return %c0_i32, %c0_i32_0 : i32, i32
  }
  func.func @transform_13(%arg0: i32) -> (i32, i32) {
    %c0_i32 = arith.constant 0 : i32
    %c0_i32_0 = arith.constant 0 : i32
    %c0_i32_1 = arith.constant 0 : i32
    return %c0_i32, %c0_i32_0 : i32, i32
  }
  func.func @transform_14(%arg0: i32) -> (i32, i32) {
    %c0_i32 = arith.constant 0 : i32
    %c0_i32_0 = arith.constant 0 : i32
    %c0_i32_1 = arith.constant 0 : i32
    return %c0_i32, %c0_i32_0 : i32, i32
  }
  func.func @transform_15(%arg0: i32) -> (i32, i32) {
    %c0_i32 = arith.constant 0 : i32
    %c0_i32_0 = arith.constant 0 : i32
    %c0_i32_1 = arith.constant 0 : i32
    return %c0_i32, %c0_i32_0 : i32, i32
  }
  func.func @transform_16(%arg0: i32) -> (i32, i32) {
    %c0_i32 = arith.constant 0 : i32
    %c0_i32_0 = arith.constant 0 : i32
    %c0_i32_1 = arith.constant 0 : i32
    return %c0_i32, %c0_i32_0 : i32, i32
  }
  func.func @transform_17(%arg0: i32) -> (i32, i32) {
    %c0_i32 = arith.constant 0 : i32
    %c0_i32_0 = arith.constant 0 : i32
    %c0_i32_1 = arith.constant 0 : i32
    return %c0_i32, %c0_i32_0 : i32, i32
  }
  func.func @transform_18(%arg0: i32) -> (i32, i32) {
    %c0_i32 = arith.constant 0 : i32
    %c0_i32_0 = arith.constant 0 : i32
    %c0_i32_1 = arith.constant 0 : i32
    return %c0_i32, %c0_i32_0 : i32, i32
  }
}

</mosaic_0001>

<bundles_post_ra>
// kernel: qnet_forward.1
= control target key start
LH: loop header
LB: loop body
LE: loop exit
PB: predicated region body
PF: predicated region fallthrough
CT: control target
= control target key end

     0   :  { %vm135_vm0 = vcmask 293888   ;;  %vm328_vm1 = vcmask 1043456   ;;  %vm781_vm2 = vcmask 261120   ;;  %vm4511_vm3 = vmmov 0   ;;  %s4513_s25 = smov 64   ;;  %s5470_s1 = inlined_call_operand.vmem [shape: f32[36,32], index: 1, kind: input, shape index: {}]   ;;  %s5471_s0 = inlined_call_operand.vmem [shape: f32[512,36], index: 0, kind: input, shape index: {}]   ;;  %s5472_s2 = inlined_call_operand.vmem [shape: f32[1,32], index: 2, kind: input, shape index: {}]   ;;  %s5473_s3 = inlined_call_operand.vmem [shape: f32[32,32], index: 3, kind: input, shape index: {}]   ;;  %s5474_s6 = inlined_call_operand.vmem [shape: f32[32,128], index: 6, kind: input, shape index: {}]   ;;  %s5475_s5 = inlined_call_operand.vmem [shape: f32[16,32], index: 5, kind: input, shape index: {}]   ;;  %s5476_s7 = inlined_call_operand.vmem [shape: f32[32,128], index: 7, kind: input, shape index: {}]   ;;  %s5477_s8 = inlined_call_operand.vmem [shape: f32[1,128], index: 8, kind: input, shape index: {}]   ;;  %s5478_s9 = inlined_call_operand.vmem [shape: f32[32,128], index: 9, kind: input, shape index: {}]   ;;  %s5479_s10 = inlined_call_operand.vmem [shape: f32[32,128], index: 10, kind: input, shape index: {}]   ;;  %s5480_s11 = inlined_call_operand.vmem [shape: f32[1,128], index: 11, kind: input, shape index: {}]   ;;  %s5481_s4 = inlined_call_operand.vmem [shape: f32[1,32], index: 4, kind: input, shape index: {}]   ;;  %s5482_s15 = inlined_call_operand.vmem [shape: f32[32,32], index: 15, kind: input, shape index: {}]   ;;  %s5483_s13 = inlined_call_operand.vmem [shape: f32[32,32], index: 13, kind: input, shape index: {}]   ;;  %s5484_s12 = inlined_call_operand.vmem [shape: f32[16,32], index: 12, kind: input, shape index: {}]   ;;  %s5485_s14 = inlined_call_operand.vmem [shape: f32[1,32], index: 14, kind: input, shape index: {}]   ;;  %s5486_s16 = inlined_call_operand.vmem [shape: f32[1,32], index: 16, kind: input, shape index: {}]   ;;  %s5487_s17 = inlined_call_operand.vmem [shape: f32[1,32], index: 17, kind: input, shape index: {}]   ;;  %s5488_s18 = inlined_call_operand.vmem [shape: f32[2,128], index: 18, kind: output, shape index: {}]  }
   0x1   :  { %5491 = sst [smem:[#allocation2_spill]] %s5470_s1  ;;  %vm923_vm4 = vcmask 1040384   ;;  %vm1958_vm5 = vcmask 1041408   ;;  %vm1961_vm6 = vcmask 1045504   ;;  %vm3480_vm7 = vcmask 64512  }
   0x2   :  { %5492 = sst [smem:[#allocation3_spill]] %s5471_s0  ;;  %s5494_s29 = sld [smem:[#allocation2_spill]]  ;;  %vm3482_vm8 = vcmask 326656   ;;  %vm3484_vm9 = vcmask 588800  }
   0x3   :  { %5493 = sst [smem:[#allocation4_spill]] %s5472_s2  ;;  %s5495_s23 = sld [smem:[#allocation3_spill]] }
   0x4   :  { %s5496_s28 = sld [smem:[#allocation4_spill]] }
   0x8   :  { %v123_v0 = vld [vmem:[%s5494_s29] sm:$0xff]  ;;  %v124_v1 = vld [vmem:[%s5494_s29 + $0x8] sm:$0xff]  ;;  %v125_v2 = vld [vmem:[%s5494_s29 + $0x10] sm:$0xff] }
   0x9   :  { %v4185_v3 = vpack.c.bf16 %v124_v1, %v123_v0  ;;  %v126_v4 = vld [vmem:[%s5494_s29 + $0x18] sm:$0xff]  ;;  %v59_v5 = vld [vmem:[%s5495_s23] sm:$0xff]  ;;  %v60_v8 = vld [vmem:[%s5495_s23 + $0x8] sm:$0xff] }
   0xa   :  { %v4189_v6 = vpack.c.bf16 %v126_v4, %v125_v2  ;;  %3814 = vmatprep.mubr.msk.f32.mxu0 %vm135_vm0, %v59_v5  ;;  %v127_v7 = vld [vmem:[%s5494_s29 + $0x20] sm:$0xf]  ;;  %v61_v9 = vld [vmem:[%s5495_s23 + $0x10] sm:$0xff]  ;;  %v62_v10 = vld [vmem:[%s5495_s23 + $0x18] sm:$0xff] }
   0xb   :  { %4186 = vmatprep.subr.bf16.mxu0 %v4185_v3  ;;  %v63_v11 = vld [vmem:[%s5495_s23 + $0x20] sm:$0xff]  ;;  %v64_v12 = vld [vmem:[%s5495_s23 + $0x28] sm:$0xff]  ;;  %v65_v13 = vld [vmem:[%s5495_s23 + $0x30] sm:$0xff] }
   0xc   :  { %4188 = vmatpush3.bf16.msra.mxu0 %v4185_v3  ;;  %v66_v14 = vld [vmem:[%s5495_s23 + $0x38] sm:$0xff]  ;;  %v67_v15 = vld [vmem:[%s5495_s23 + $0x40] sm:$0xff]  ;;  %v68_v16 = vld [vmem:[%s5495_s23 + $0x48] sm:$0xff] }
   0xd   :  { %4190 = vmatprep.subr.bf16.mxu0 %v4189_v6  ;;  %v69_v17 = vld [vmem:[%s5495_s23 + $0x50] sm:$0xff]  ;;  %v70_v18 = vld [vmem:[%s5495_s23 + $0x58] sm:$0xff]  ;;  %v71_v19 = vld [vmem:[%s5495_s23 + $0x60] sm:$0xff] }
   0xe   :  { %v72_v20 = vld [vmem:[%s5495_s23 + $0x68] sm:$0xff]  ;;  %v73_v21 = vld [vmem:[%s5495_s23 + $0x70] sm:$0xff]  ;;  %v74_v22 = vld [vmem:[%s5495_s23 + $0x78] sm:$0xff] }
   0xf   :  { %v75_v23 = vld [vmem:[%s5495_s23 + $0x80] sm:$0xff]  ;;  %v76_v24 = vld [vmem:[%s5495_s23 + $0x88] sm:$0xff]  ;;  %v77_v25 = vld [vmem:[%s5495_s23 + $0x90] sm:$0xff] }
  0x10   :  { %4192 = vmatpush3.bf16.msra.mxu0 %v4189_v6  ;;  %v78_v26 = vld [vmem:[%s5495_s23 + $0x98] sm:$0xff]  ;;  %v79_v27 = vld [vmem:[%s5495_s23 + $0xa0] sm:$0xff]  ;;  %v80_v28 = vld [vmem:[%s5495_s23 + $0xa8] sm:$0xff] }
  0x11   :  { %3812 = vmatprep.subr.msk.mxu0 %vm328_vm1, %v127_v7  ;;  %v81_v29 = vld [vmem:[%s5495_s23 + $0xb0] sm:$0xff]  ;;  %v82_v30 = vld [vmem:[%s5495_s23 + $0xb8] sm:$0xff]  ;;  %v83_v31 = vld [vmem:[%s5495_s23 + $0xc0] sm:$0xff] }
  0x12   :  { %v84_v32 = vld [vmem:[%s5495_s23 + $0xc8] sm:$0xff]  ;;  %v85_v33 = vld [vmem:[%s5495_s23 + $0xd0] sm:$0xff]  ;;  %v86_v34 = vld [vmem:[%s5495_s23 + $0xd8] sm:$0xff] }
  0x13   :  { %v87_v35 = vld [vmem:[%s5495_s23 + $0xe0] sm:$0xff]  ;;  %v88_v36 = vld [vmem:[%s5495_s23 + $0xe8] sm:$0xff]  ;;  %v89_v37 = vld [vmem:[%s5495_s23 + $0xf0] sm:$0xff] }
  0x14   :  { %3813 = vmatpush3.msk.msra.mxu0 %vm328_vm1, %v127_v7  ;;  %v90_v38 = vld [vmem:[%s5495_s23 + $0xf8] sm:$0xff]  ;;  %v91_v39 = vld [vmem:[%s5495_s23 + $0x100] sm:$0xff]  ;;  %v92_v40 = vld [vmem:[%s5495_s23 + $0x108] sm:$0xff] }
  0x15   :  { %3815 = vmatmul.mubr.msk.f32.vlgmr.msra.gmra.mrb[0].mxu0 %vm135_vm0, %v60_v8  ;;  %v93_v41 = vld [vmem:[%s5495_s23 + $0x110] sm:$0xff]  ;;  %v94_v42 = vld [vmem:[%s5495_s23 + $0x118] sm:$0xff]  ;;  %v95_v43 = vld [vmem:[%s5495_s23 + $0x120] sm:$0xff] }
  0x16   :  { %3817 = vmatprep.mubr.msk.f32.mxu0 %vm135_vm0, %v61_v9  ;;  %v96_v44 = vld [vmem:[%s5495_s23 + $0x128] sm:$0xff]  ;;  %v97_v45 = vld [vmem:[%s5495_s23 + $0x130] sm:$0xff]  ;;  %v98_v46 = vld [vmem:[%s5495_s23 + $0x138] sm:$0xff] }
  0x17   :  { %v99_v47 = vld [vmem:[%s5495_s23 + $0x140] sm:$0xff]  ;;  %v100_v48 = vld [vmem:[%s5495_s23 + $0x148] sm:$0xff]  ;;  %v101_v49 = vld [vmem:[%s5495_s23 + $0x150] sm:$0xff] }
  0x18   :  { %v102_v50 = vld [vmem:[%s5495_s23 + $0x158] sm:$0xff]  ;;  %v103_v51 = vld [vmem:[%s5495_s23 + $0x160] sm:$0xff]  ;;  %v104_v52 = vld [vmem:[%s5495_s23 + $0x168] sm:$0xff] }
  0x19   :  { %3818 = vmatmul.mubr.msk.f32.gmra.mrb[2].mxu0 %vm135_vm0, %v62_v10  ;;  %v105_v53 = vld [vmem:[%s5495_s23 + $0x170] sm:$0xff]  ;;  %v106_v54 = vld [vmem:[%s5495_s23 + $0x178] sm:$0xff]  ;;  %v107_v55 = vld [vmem:[%s5495_s23 + $0x180] sm:$0xff] }
  0x1a   :  { %3820 = vmatprep.mubr.msk.f32.mxu0 %vm135_vm0, %v63_v11  ;;  %v108_v56 = vld [vmem:[%s5495_s23 + $0x188] sm:$0xff]  ;;  %v109_v57 = vld [vmem:[%s5495_s23 + $0x190] sm:$0xff]  ;;  %v110_v58 = vld [vmem:[%s5495_s23 + $0x198] sm:$0xff] }
  0x1b   :  { %v111_v59 = vld [vmem:[%s5495_s23 + $0x1a0] sm:$0xff]  ;;  %v112_v60 = vld [vmem:[%s5495_s23 + $0x1a8] sm:$0xff]  ;;  %v113_v61 = vld [vmem:[%s5495_s23 + $0x1b0] sm:$0xff] }
  0x1c   :  { %v114_v62 = vld [vmem:[%s5495_s23 + $0x1b8] sm:$0xff]  ;;  %v115_v63 = vld [vmem:[%s5495_s23 + $0x1c0] sm:$0xff]  ;;  %v116_v0 = vld [vmem:[%s5495_s23 + $0x1c8] sm:$0xff] }
  0x1d   :  { %3821 = vmatmul.mubr.msk.f32.gmra.mrb[4].mxu0 %vm135_vm0, %v64_v12  ;;  %v117_v1 = vld [vmem:[%s5495_s23 + $0x1d0] sm:$0xff]  ;;  %v118_v2 = vld [vmem:[%s5495_s23 + $0x1d8] sm:$0xff]  ;;  %v119_v3 = vld [vmem:[%s5495_s23 + $0x1e0] sm:$0xff] }
  0x1e   :  { %3823 = vmatprep.mubr.msk.f32.mxu0 %vm135_vm0, %v65_v13  ;;  %v120_v4 = vld [vmem:[%s5495_s23 + $0x1e8] sm:$0xff]  ;;  %v121_v5 = vld [vmem:[%s5495_s23 + $0x1f0] sm:$0xff]  ;;  %v122_v6 = vld [vmem:[%s5495_s23 + $0x1f8] sm:$0xff] }
  0x1f   :  { %v4887_v7 = vld [vmem:[%s5496_s28] ss:$0 sm:$0xff] }
  0x21   :  { %3824 = vmatmul.mubr.msk.f32.gmra.mrb[6].mxu0 %vm135_vm0, %v66_v14 }
  0x22   :  { %3826 = vmatprep.mubr.msk.f32.mxu0 %vm135_vm0, %v67_v15 }
  0x25   :  { %3827 = vmatmul.mubr.msk.f32.gmra.mrb[8].mxu0 %vm135_vm0, %v68_v16 }
  0x26   :  { %3829 = vmatprep.mubr.msk.f32.mxu0 %vm135_vm0, %v69_v17 }
  0x29   :  { %3830 = vmatmul.mubr.msk.f32.gmra.mrb[10].mxu0 %vm135_vm0, %v70_v18 }
  0x2a   :  { %3832 = vmatprep.mubr.msk.f32.mxu0 %vm135_vm0, %v71_v19 }
  0x2d   :  { %3833 = vmatmul.mubr.msk.f32.gmra.mrb[12].mxu0 %vm135_vm0, %v72_v20 }
  0x2e   :  { %3835 = vmatprep.mubr.msk.f32.mxu0 %vm135_vm0, %v73_v21 }
  0x31   :  { %3836 = vmatmul.mubr.msk.f32.gmra.mrb[14].mxu0 %vm135_vm0, %v74_v22 }
  0x32   :  { %3838 = vmatprep.mubr.msk.f32.mxu0 %vm135_vm0, %v75_v23 }
  0x35   :  { %3839 = vmatmul.mubr.msk.f32.gmra.mrb[16].mxu0 %vm135_vm0, %v76_v24 }
  0x36   :  { %3841 = vmatprep.mubr.msk.f32.mxu0 %vm135_vm0, %v77_v25 }
  0x39   :  { %3842 = vmatmul.mubr.msk.f32.gmra.mrb[18].mxu0 %vm135_vm0, %v78_v26 }
  0x3a   :  { %3844 = vmatprep.mubr.msk.f32.mxu0 %vm135_vm0, %v79_v27 }
  0x3d   :  { %3845 = vmatmul.mubr.msk.f32.gmra.mrb[20].mxu0 %vm135_vm0, %v80_v28 }
  0x3e   :  { %3847 = vmatprep.mubr.msk.f32.mxu0 %vm135_vm0, %v81_v29 }
  0x41   :  { %3848 = vmatmul.mubr.msk.f32.gmra.mrb[22].mxu0 %vm135_vm0, %v82_v30  ;;  %v925_v30 = vld [vmem:[%s5473_s3] sm:$0xff] }
  0x42   :  { %3850 = vmatprep.mubr.msk.f32.mxu0 %vm135_vm0, %v83_v31  ;;  %v926_v31 = vld [vmem:[%s5473_s3 + $0x8] sm:$0xff] }
  0x45   :  { %3851 = vmatmul.mubr.msk.f32.gmra.mrb[24].mxu0 %vm135_vm0, %v84_v32 }
  0x46   :  { %3853 = vmatprep.mubr.msk.f32.mxu0 %vm135_vm0, %v85_v33 }
  0x49   :  { %3854 = vmatmul.mubr.msk.f32.gmra.mrb[26].mxu0 %vm135_vm0, %v86_v34 }
  0x4a   :  { %3856 = vmatprep.mubr.msk.f32.mxu0 %vm135_vm0, %v87_v35  ;;  %v4194_v35 = vpack.c.bf16 %v926_v31, %v925_v30 }
  0x4d   :  { %3857 = vmatmul.mubr.msk.f32.gmra.mrb[28].mxu0 %vm135_vm0, %v88_v36 }
  0x4e   :  { %3859 = vmatprep.mubr.msk.f32.mxu0 %vm135_vm0, %v89_v37 }
  0x51   :  { %3860 = vmatmul.mubr.msk.f32.gmra.mrb[30].mxu0 %vm135_vm0, %v90_v38 }
  0x52   :  { %3862 = vmatprep.mubr.msk.f32.mxu0 %vm135_vm0, %v91_v39  ;;  %v4510_v39 = vmov 0.0|0.0  }
  0x53   :  { %4193 = vmatprep.subr.bf16.mxu1 %v4510_v39  ;;  %4299 = vmatprep.subr.bf16.mxu0 %v4510_v39 }
  0x54   :  { %4195 = vmatpush3.bf16.msra.mxu1 %v4194_v35 }
  0x55   :  { %3863 = vmatmul.mubr.msk.f32.gmra.mrb[32].mxu0 %vm135_vm0, %v92_v40  ;;  %v927_v40 = vld [vmem:[%s5473_s3 + $0x10] sm:$0xff]  ;;  %4196 = vmatprep.subr.bf16.mxu1 %v4510_v39 }
  0x56   :  { %3865 = vmatprep.mubr.msk.f32.mxu0 %vm135_vm0, %v93_v41  ;;  %v928_v41 = vld [vmem:[%s5473_s3 + $0x18] sm:$0xff]  ;;  %s4514_s3 = smov 32  }
  0x59   :  { %3866 = vmatmul.mubr.msk.f32.gmra.mrb[34].mxu0 %vm135_vm0, %v94_v42 }
  0x5a   :  { %3868 = vmatprep.mubr.msk.f32.mxu0 %vm135_vm0, %v95_v43 }
  0x5d   :  { %3869 = vmatmul.mubr.msk.f32.gmra.mrb[36].mxu0 %vm135_vm0, %v96_v44  ;;  %v4197_v44 = vpack.c.bf16 %v928_v41, %v927_v40 }
  0x5e   :  { %3871 = vmatprep.mubr.msk.f32.mxu0 %vm135_vm0, %v97_v45  ;;  %v1009_v45 = vld [vmem:[%s5474_s6] sm:$0xff] }
  0x5f   :  { %4198 = vmatpush3.bf16.msra.mxu1 %v4197_v44 }
  0x61   :  { %3872 = vmatmul.mubr.msk.f32.gmra.mrb[38].mxu0 %vm135_vm0, %v98_v46  ;;  %v1010_v46 = vld [vmem:[%s5474_s6 + $0x8] sm:$0xff] }
  0x62   :  { %3874 = vmatprep.mubr.msk.f32.mxu0 %vm135_vm0, %v99_v47 }
  0x65   :  { %3875 = vmatmul.mubr.msk.f32.gmra.mrb[40].mxu0 %vm135_vm0, %v100_v48  ;;  %v4512_v48 = vmov 0.0  }
  0x66   :  { %3877 = vmatprep.mubr.msk.f32.mxu0 %vm135_vm0, %v101_v49  ;;  %3918 = vmatprep.mubr.msk.f32.mxu1 %vm4511_vm3, %v4512_v48  ;;  %v4925_v49 = vpack.c.bf16 %v1010_v46, %v1009_v45 }
  0x68   :  { %4200 = vmatprep.subr.bf16.mxu1 %v4925_v49 }
  0x69   :  { %3878 = vmatmul.mubr.msk.f32.gmra.mrb[42].mxu0 %vm135_vm0, %v102_v50 }
  0x6a   :  { %3880 = vmatprep.mubr.msk.f32.mxu0 %vm135_vm0, %v103_v51 }
  0x6d   :  { %3881 = vmatmul.mubr.msk.f32.gmra.mrb[44].mxu0 %vm135_vm0, %v104_v52 }
  0x6e   :  { %3883 = vmatprep.mubr.msk.f32.mxu0 %vm135_vm0, %v105_v53 }
  0x71   :  { %3884 = vmatmul.mubr.msk.f32.gmra.mrb[46].mxu0 %vm135_vm0, %v106_v54 }
  0x72   :  { %3886 = vmatprep.mubr.msk.f32.mxu0 %vm135_vm0, %v107_v55 }
  0x75   :  { %3887 = vmatmul.mubr.msk.f32.gmra.mrb[48].mxu0 %vm135_vm0, %v108_v56 }
  0x76   :  { %3889 = vmatprep.mubr.msk.f32.mxu0 %vm135_vm0, %v109_v57 }
  0x79   :  { %3890 = vmatmul.mubr.msk.f32.gmra.mrb[50].mxu0 %vm135_vm0, %v110_v58 }
  0x7a   :  { %3892 = vmatprep.mubr.msk.f32.mxu0 %vm135_vm0, %v111_v59 }
  0x7d   :  { %3893 = vmatmul.mubr.msk.f32.gmra.mrb[52].mxu0 %vm135_vm0, %v112_v60 }
  0x7e   :  { %3895 = vmatprep.mubr.msk.f32.mxu0 %vm135_vm0, %v113_v61 }
  0x81   :  { %3896 = vmatmul.mubr.msk.f32.gmra.mrb[54].mxu0 %vm135_vm0, %v114_v62 }
  0x82   :  { %3898 = vmatprep.mubr.msk.f32.mxu0 %vm135_vm0, %v115_v63 }
  0x85   :  { %3899 = vmatmul.mubr.msk.f32.gmra.mrb[56].mxu0 %vm135_vm0, %v116_v0 }
  0x86   :  { %3901 = vmatprep.mubr.msk.f32.mxu0 %vm135_vm0, %v117_v1 }
  0x89   :  { %3902 = vmatmul.mubr.msk.f32.gmra.mrb[58].mxu0 %vm135_vm0, %v118_v2 }
  0x8a   :  { %3904 = vmatprep.mubr.msk.f32.mxu0 %vm135_vm0, %v119_v3 }
  0x8d   :  { %3905 = vmatmul.mubr.msk.f32.gmra.mrb[60].mxu0 %vm135_vm0, %v120_v4 }
  0x8e   :  { %3907 = vmatprep.mubr.msk.f32.mxu0 %vm135_vm0, %v121_v5 }
  0x91   :  { %3908 = vmatmul.mubr.msk.f32.gmra.mrb[62].mxu0 %vm135_vm0, %v122_v6 }
  0x92   :  { %4105 = vmatprep.mubr.msk.f32.mxu0 %vm4511_vm3, %v4512_v48 }
  0xe8   :  { %v3816_v8 = vpop.f32.mrb[0].mxu0 }
  0xe9   :  { %v404_v9 = vadd.f32 %v3816_v8, %v4887_v7  ;;  %v398_v10 = vpop.f32.mrb[1].mxu0 }
  0xea   :  { %v399_v11 = vadd.f32 %v4887_v7, %v398_v10 }
  0xeb   :  { %v718_v12 = vmax.f32 %v404_v9, 0.0 }
  0xec   :  { %v717_v13 = vmax.f32 %v399_v11, 0.0  ;;  %v3819_v14 = vpop.f32.mrb[2].mxu0 }
  0xed   :  { %v783_v15 = vsel %vm781_vm2, %v718_v12, 0.0  ;;  %v414_v16 = vadd.f32 %v3819_v14, %v4887_v7  ;;  %v408_v17 = vpop.f32.mrb[3].mxu0 }
  0xee   :  { %v782_v18 = vsel %vm781_vm2, %v717_v13, 0.0  ;;  %v409_v19 = vadd.f32 %v4887_v7, %v408_v17 }
  0xef   :  { %v784_v20 = vadd.f32 %v783_v15, %v782_v18  ;;  %v720_v21 = vmax.f32 %v414_v16, 0.0 }
  0xf0   :  { %v719_v22 = vmax.f32 %v409_v19, 0.0  ;;  %v3822_v23 = vpop.f32.mrb[4].mxu0 }
  0xf1   :  { %v424_v24 = vadd.f32 %v3822_v23, %v4887_v7  ;;  %v418_v25 = vpop.f32.mrb[5].mxu0  ;;  %v787_v28 = vsel %vm781_vm2, %v720_v21, 0.0 }
  0xf2   :  { %v785_v26 = vsel %vm781_vm2, %v719_v22, 0.0  ;;  %v419_v27 = vadd.f32 %v4887_v7, %v418_v25 }
  0xf3   :  { %v786_v29 = vadd.f32 %v785_v26, %v784_v20  ;;  %v722_v32 = vmax.f32 %v424_v24, 0.0 }
  0xf4   :  { %v721_v33 = vmax.f32 %v419_v27, 0.0  ;;  %v3825_v34 = vpop.f32.mrb[6].mxu0 }
  0xf5   :  { %v788_v36 = vadd.f32 %v787_v28, %v786_v29  ;;  %v434_v37 = vadd.f32 %v3825_v34, %v4887_v7  ;;  %v428_v38 = vpop.f32.mrb[7].mxu0  ;;  %v791_v50 = vsel %vm781_vm2, %v722_v32, 0.0 }
  0xf6   :  { %v789_v42 = vsel %vm781_vm2, %v721_v33, 0.0  ;;  %v429_v43 = vadd.f32 %v4887_v7, %v428_v38 }
  0xf7   :  { %v790_v47 = vadd.f32 %v789_v42, %v788_v36  ;;  %v724_v51 = vmax.f32 %v434_v37, 0.0 }
  0xf8   :  { %v723_v52 = vmax.f32 %v429_v43, 0.0  ;;  %v3828_v53 = vpop.f32.mrb[8].mxu0 }
  0xf9   :  { %v792_v54 = vadd.f32 %v791_v50, %v790_v47  ;;  %v444_v55 = vadd.f32 %v3828_v53, %v4887_v7  ;;  %v438_v56 = vpop.f32.mrb[9].mxu0  ;;  %v795_v60 = vsel %vm781_vm2, %v724_v51, 0.0 }
  0xfa   :  { %v793_v57 = vsel %vm781_vm2, %v723_v52, 0.0  ;;  %v439_v58 = vadd.f32 %v4887_v7, %v438_v56 }
  0xfb   :  { %v794_v59 = vadd.f32 %v793_v57, %v792_v54  ;;  %v726_v61 = vmax.f32 %v444_v55, 0.0 }
  0xfc   :  { %v725_v62 = vmax.f32 %v439_v58, 0.0  ;;  %v3831_v63 = vpop.f32.mrb[10].mxu0 }
  0xfd   :  { %v796_v0 = vadd.f32 %v795_v60, %v794_v59  ;;  %v454_v1 = vadd.f32 %v3831_v63, %v4887_v7  ;;  %v448_v2 = vpop.f32.mrb[11].mxu0  ;;  %v799_v6 = vsel %vm781_vm2, %v726_v61, 0.0 }
  0xfe   :  { %v797_v3 = vsel %vm781_vm2, %v725_v62, 0.0  ;;  %v449_v4 = vadd.f32 %v4887_v7, %v448_v2 }
  0xff   :  { %v798_v5 = vadd.f32 %v797_v3, %v796_v0  ;;  %v728_v8 = vmax.f32 %v454_v1, 0.0 }
 0x100   :  { %v727_v9 = vmax.f32 %v449_v4, 0.0  ;;  %v3834_v10 = vpop.f32.mrb[12].mxu0 }
 0x101   :  { %v800_v11 = vadd.f32 %v799_v6, %v798_v5  ;;  %v464_v12 = vadd.f32 %v3834_v10, %v4887_v7  ;;  %v458_v13 = vpop.f32.mrb[13].mxu0  ;;  %v803_v17 = vsel %vm781_vm2, %v728_v8, 0.0 }
 0x102   :  { %v801_v14 = vsel %vm781_vm2, %v727_v9, 0.0  ;;  %v459_v15 = vadd.f32 %v4887_v7, %v458_v13 }
 0x103   :  { %v802_v16 = vadd.f32 %v801_v14, %v800_v11  ;;  %v730_v18 = vmax.f32 %v464_v12, 0.0 }
 0x104   :  { %v729_v19 = vmax.f32 %v459_v15, 0.0  ;;  %v3837_v20 = vpop.f32.mrb[14].mxu0 }
 0x105   :  { %v804_v21 = vadd.f32 %v803_v17, %v802_v16  ;;  %v474_v22 = vadd.f32 %v3837_v20, %v4887_v7  ;;  %v468_v23 = vpop.f32.mrb[15].mxu0  ;;  %v807_v27 = vsel %vm781_vm2, %v730_v18, 0.0 }
 0x106   :  { %v805_v24 = vsel %vm781_vm2, %v729_v19, 0.0  ;;  %v469_v25 = vadd.f32 %v4887_v7, %v468_v23 }
 0x107   :  { %v806_v26 = vadd.f32 %v805_v24, %v804_v21  ;;  %v732_v28 = vmax.f32 %v474_v22, 0.0 }
 0x108   :  { %v731_v29 = vmax.f32 %v469_v25, 0.0  ;;  %v3840_v30 = vpop.f32.mrb[16].mxu0 }
 0x109   :  { %v808_v31 = vadd.f32 %v807_v27, %v806_v26  ;;  %v484_v32 = vadd.f32 %v3840_v30, %v4887_v7  ;;  %v478_v33 = vpop.f32.mrb[17].mxu0  ;;  %v811_v37 = vsel %vm781_vm2, %v732_v28, 0.0 }
 0x10a   :  { %v809_v34 = vsel %vm781_vm2, %v731_v29, 0.0  ;;  %v479_v35 = vadd.f32 %v4887_v7, %v478_v33 }
 0x10b   :  { %v810_v36 = vadd.f32 %v809_v34, %v808_v31  ;;  %v734_v38 = vmax.f32 %v484_v32, 0.0 }
 0x10c   :  { %v733_v40 = vmax.f32 %v479_v35, 0.0  ;;  %v3843_v41 = vpop.f32.mrb[18].mxu0 }
 0x10d   :  { %v812_v42 = vadd.f32 %v811_v37, %v810_v36  ;;  %v494_v43 = vadd.f32 %v3843_v41, %v4887_v7  ;;  %v488_v44 = vpop.f32.mrb[19].mxu0  ;;  %v815_v50 = vsel %vm781_vm2, %v734_v38, 0.0 }
 0x10e   :  { %v813_v45 = vsel %vm781_vm2, %v733_v40, 0.0  ;;  %v489_v46 = vadd.f32 %v4887_v7, %v488_v44 }
 0x10f   :  { %v814_v47 = vadd.f32 %v813_v45, %v812_v42  ;;  %v736_v51 = vmax.f32 %v494_v43, 0.0 }
 0x110   :  { %v735_v52 = vmax.f32 %v489_v46, 0.0  ;;  %v3846_v53 = vpop.f32.mrb[20].mxu0 }
 0x111   :  { %v816_v54 = vadd.f32 %v815_v50, %v814_v47  ;;  %v504_v55 = vadd.f32 %v3846_v53, %v4887_v7  ;;  %v498_v56 = vpop.f32.mrb[21].mxu0  ;;  %v819_v60 = vsel %vm781_vm2, %v736_v51, 0.0 }
 0x112   :  { %v817_v57 = vsel %vm781_vm2, %v735_v52, 0.0  ;;  %v499_v58 = vadd.f32 %v4887_v7, %v498_v56 }
 0x113   :  { %v818_v59 = vadd.f32 %v817_v57, %v816_v54  ;;  %v738_v61 = vmax.f32 %v504_v55, 0.0 }
 0x114   :  { %v737_v62 = vmax.f32 %v499_v58, 0.0  ;;  %v3849_v63 = vpop.f32.mrb[22].mxu0 }
 0x115   :  { %v820_v0 = vadd.f32 %v819_v60, %v818_v59  ;;  %v514_v1 = vadd.f32 %v3849_v63, %v4887_v7  ;;  %v508_v2 = vpop.f32.mrb[23].mxu0  ;;  %v823_v6 = vsel %vm781_vm2, %v738_v61, 0.0 }
 0x116   :  { %v821_v3 = vsel %vm781_vm2, %v737_v62, 0.0  ;;  %v509_v4 = vadd.f32 %v4887_v7, %v508_v2 }
 0x117   :  { %v822_v5 = vadd.f32 %v821_v3, %v820_v0  ;;  %v740_v8 = vmax.f32 %v514_v1, 0.0 }
 0x118   :  { %v739_v9 = vmax.f32 %v509_v4, 0.0  ;;  %v3852_v10 = vpop.f32.mrb[24].mxu0 }
 0x119   :  { %v824_v11 = vadd.f32 %v823_v6, %v822_v5  ;;  %v524_v12 = vadd.f32 %v3852_v10, %v4887_v7  ;;  %v518_v13 = vpop.f32.mrb[25].mxu0  ;;  %v827_v17 = vsel %vm781_vm2, %v740_v8, 0.0 }
 0x11a   :  { %v825_v14 = vsel %vm781_vm2, %v739_v9, 0.0  ;;  %v519_v15 = vadd.f32 %v4887_v7, %v518_v13 }
 0x11b   :  { %v826_v16 = vadd.f32 %v825_v14, %v824_v11  ;;  %v742_v18 = vmax.f32 %v524_v12, 0.0 }
 0x11c   :  { %v741_v19 = vmax.f32 %v519_v15, 0.0  ;;  %v3855_v20 = vpop.f32.mrb[26].mxu0 }
 0x11d   :  { %v828_v21 = vadd.f32 %v827_v17, %v826_v16  ;;  %v534_v22 = vadd.f32 %v3855_v20, %v4887_v7  ;;  %v528_v23 = vpop.f32.mrb[27].mxu0  ;;  %v831_v27 = vsel %vm781_vm2, %v742_v18, 0.0 }
 0x11e   :  { %v829_v24 = vsel %vm781_vm2, %v741_v19, 0.0  ;;  %v529_v25 = vadd.f32 %v4887_v7, %v528_v23 }
 0x11f   :  { %v830_v26 = vadd.f32 %v829_v24, %v828_v21  ;;  %v744_v28 = vmax.f32 %v534_v22, 0.0 }
 0x120   :  { %v743_v29 = vmax.f32 %v529_v25, 0.0  ;;  %v3858_v30 = vpop.f32.mrb[28].mxu0 }
 0x121   :  { %v832_v31 = vadd.f32 %v831_v27, %v830_v26  ;;  %v544_v32 = vadd.f32 %v3858_v30, %v4887_v7  ;;  %v538_v33 = vpop.f32.mrb[29].mxu0  ;;  %v835_v37 = vsel %vm781_vm2, %v744_v28, 0.0 }
 0x122   :  { %v833_v34 = vsel %vm781_vm2, %v743_v29, 0.0  ;;  %v539_v35 = vadd.f32 %v4887_v7, %v538_v33 }
 0x123   :  { %v834_v36 = vadd.f32 %v833_v34, %v832_v31  ;;  %v746_v38 = vmax.f32 %v544_v32, 0.0 }
 0x124   :  { %v745_v40 = vmax.f32 %v539_v35, 0.0  ;;  %v3861_v41 = vpop.f32.mrb[30].mxu0 }
 0x125   :  { %v836_v42 = vadd.f32 %v835_v37, %v834_v36  ;;  %v554_v43 = vadd.f32 %v3861_v41, %v4887_v7  ;;  %v548_v44 = vpop.f32.mrb[31].mxu0  ;;  %v839_v50 = vsel %vm781_vm2, %v746_v38, 0.0 }
 0x126   :  { %v837_v45 = vsel %vm781_vm2, %v745_v40, 0.0  ;;  %v549_v46 = vadd.f32 %v4887_v7, %v548_v44 }
 0x127   :  { %v838_v47 = vadd.f32 %v837_v45, %v836_v42  ;;  %v748_v51 = vmax.f32 %v554_v43, 0.0 }
 0x128   :  { %v747_v52 = vmax.f32 %v549_v46, 0.0  ;;  %v3864_v53 = vpop.f32.mrb[32].mxu0 }
 0x129   :  { %v840_v54 = vadd.f32 %v839_v50, %v838_v47  ;;  %v564_v55 = vadd.f32 %v3864_v53, %v4887_v7  ;;  %v558_v56 = vpop.f32.mrb[33].mxu0  ;;  %v843_v61 = vsel %vm781_vm2, %v748_v51, 0.0 }
 0x12a   :  { %v841_v57 = vsel %vm781_vm2, %v747_v52, 0.0  ;;  %v559_v58 = vadd.f32 %v4887_v7, %v558_v56 }
 0x12b   :  { %v842_v59 = vadd.f32 %v841_v57, %v840_v54  ;;  %v750_v60 = vmax.f32 %v564_v55, 0.0 }
 0x12c   :  { %v749_v62 = vmax.f32 %v559_v58, 0.0  ;;  %v3867_v63 = vpop.f32.mrb[34].mxu0 }
 0x12d   :  { %v4983_v0 = vadd.f32 %v843_v61, %v842_v59  ;;  %v854_v1 = vsel %vm781_vm2, %v750_v60, 0.0  ;;  %v574_v2 = vadd.f32 %v3867_v63, %v4887_v7  ;;  %v568_v3 = vpop.f32.mrb[35].mxu0 }
 0x12e   :  { %v853_v4 = vsel %vm781_vm2, %v749_v62, 0.0  ;;  %v569_v5 = vadd.f32 %v4887_v7, %v568_v3 }
 0x12f   :  { %v855_v6 = vadd.f32 %v854_v1, %v853_v4  ;;  %v752_v8 = vmax.f32 %v574_v2, 0.0 }
 0x130   :  { %v751_v9 = vmax.f32 %v569_v5, 0.0  ;;  %v3870_v10 = vpop.f32.mrb[36].mxu0 }
 0x131   :  { %v584_v11 = vadd.f32 %v3870_v10, %v4887_v7  ;;  %v578_v12 = vpop.f32.mrb[37].mxu0  ;;  %v858_v16 = vsel %vm781_vm2, %v752_v8, 0.0 }
 0x132   :  { %v856_v13 = vsel %vm781_vm2, %v751_v9, 0.0  ;;  %v579_v14 = vadd.f32 %v4887_v7, %v578_v12 }
 0x133   :  { %v857_v15 = vadd.f32 %v856_v13, %v855_v6  ;;  %v754_v17 = vmax.f32 %v584_v11, 0.0 }
 0x134   :  { %v753_v18 = vmax.f32 %v579_v14, 0.0  ;;  %v3873_v19 = vpop.f32.mrb[38].mxu0 }
 0x135   :  { %v859_v20 = vadd.f32 %v858_v16, %v857_v15  ;;  %v594_v21 = vadd.f32 %v3873_v19, %v4887_v7  ;;  %v588_v22 = vpop.f32.mrb[39].mxu0  ;;  %v862_v26 = vsel %vm781_vm2, %v754_v17, 0.0 }
 0x136   :  { %v860_v23 = vsel %vm781_vm2, %v753_v18, 0.0  ;;  %v589_v24 = vadd.f32 %v4887_v7, %v588_v22 }
 0x137   :  { %v861_v25 = vadd.f32 %v860_v23, %v859_v20  ;;  %v756_v27 = vmax.f32 %v594_v21, 0.0 }
 0x138   :  { %v755_v28 = vmax.f32 %v589_v24, 0.0  ;;  %v3876_v29 = vpop.f32.mrb[40].mxu0 }
 0x139   :  { %v863_v30 = vadd.f32 %v862_v26, %v861_v25  ;;  %v604_v31 = vadd.f32 %v3876_v29, %v4887_v7  ;;  %v598_v32 = vpop.f32.mrb[41].mxu0  ;;  %v866_v36 = vsel %vm781_vm2, %v756_v27, 0.0 }
 0x13a   :  { %v864_v33 = vsel %vm781_vm2, %v755_v28, 0.0  ;;  %v599_v34 = vadd.f32 %v4887_v7, %v598_v32 }
 0x13b   :  { %v865_v35 = vadd.f32 %v864_v33, %v863_v30  ;;  %v758_v37 = vmax.f32 %v604_v31, 0.0 }
 0x13c   :  { %v757_v38 = vmax.f32 %v599_v34, 0.0  ;;  %v3879_v40 = vpop.f32.mrb[42].mxu0 }
 0x13d   :  { %v867_v41 = vadd.f32 %v866_v36, %v865_v35  ;;  %v614_v42 = vadd.f32 %v3879_v40, %v4887_v7  ;;  %v608_v43 = vpop.f32.mrb[43].mxu0  ;;  %v870_v47 = vsel %vm781_vm2, %v758_v37, 0.0 }
 0x13e   :  { %v868_v44 = vsel %vm781_vm2, %v757_v38, 0.0  ;;  %v609_v45 = vadd.f32 %v4887_v7, %v608_v43 }
 0x13f   :  { %v869_v46 = vadd.f32 %v868_v44, %v867_v41  ;;  %v760_v50 = vmax.f32 %v614_v42, 0.0 }
 0x140   :  { %v759_v51 = vmax.f32 %v609_v45, 0.0  ;;  %v3882_v52 = vpop.f32.mrb[44].mxu0 }
 0x141   :  { %v871_v53 = vadd.f32 %v870_v47, %v869_v46  ;;  %v624_v54 = vadd.f32 %v3882_v52, %v4887_v7  ;;  %v618_v55 = vpop.f32.mrb[45].mxu0  ;;  %v874_v59 = vsel %vm781_vm2, %v760_v50, 0.0 }
 0x142   :  { %v872_v56 = vsel %vm781_vm2, %v759_v51, 0.0  ;;  %v619_v57 = vadd.f32 %v4887_v7, %v618_v55 }
 0x143   :  { %v873_v58 = vadd.f32 %v872_v56, %v871_v53  ;;  %v762_v60 = vmax.f32 %v624_v54, 0.0 }
 0x144   :  { %v761_v61 = vmax.f32 %v619_v57, 0.0  ;;  %v3885_v62 = vpop.f32.mrb[46].mxu0 }
 0x145   :  { %v875_v63 = vadd.f32 %v874_v59, %v873_v58  ;;  %v634_v1 = vadd.f32 %v3885_v62, %v4887_v7  ;;  %v628_v2 = vpop.f32.mrb[47].mxu0  ;;  %v878_v6 = vsel %vm781_vm2, %v762_v60, 0.0 }
 0x146   :  { %v876_v3 = vsel %vm781_vm2, %v761_v61, 0.0  ;;  %v629_v4 = vadd.f32 %v4887_v7, %v628_v2 }
 0x147   :  { %v877_v5 = vadd.f32 %v876_v3, %v875_v63  ;;  %v764_v8 = vmax.f32 %v634_v1, 0.0 }
 0x148   :  { %v763_v9 = vmax.f32 %v629_v4, 0.0  ;;  %v3888_v10 = vpop.f32.mrb[48].mxu0 }
 0x149   :  { %v879_v11 = vadd.f32 %v878_v6, %v877_v5  ;;  %v644_v12 = vadd.f32 %v3888_v10, %v4887_v7  ;;  %v638_v13 = vpop.f32.mrb[49].mxu0  ;;  %v882_v17 = vsel %vm781_vm2, %v764_v8, 0.0 }
 0x14a   :  { %v880_v14 = vsel %vm781_vm2, %v763_v9, 0.0  ;;  %v639_v15 = vadd.f32 %v4887_v7, %v638_v13 }
 0x14b   :  { %v881_v16 = vadd.f32 %v880_v14, %v879_v11  ;;  %v766_v18 = vmax.f32 %v644_v12, 0.0 }
 0x14c   :  { %v765_v19 = vmax.f32 %v639_v15, 0.0  ;;  %v3891_v20 = vpop.f32.mrb[50].mxu0 }
 0x14d   :  { %v883_v21 = vadd.f32 %v882_v17, %v881_v16  ;;  %v654_v22 = vadd.f32 %v3891_v20, %v4887_v7  ;;  %v648_v23 = vpop.f32.mrb[51].mxu0  ;;  %v886_v27 = vsel %vm781_vm2, %v766_v18, 0.0  ;;  %v845_v17 = vrot.slane %v4983_v0, 4 }
 0x14e   :  { %v884_v24 = vsel %vm781_vm2, %v765_v19, 0.0  ;;  %v649_v25 = vadd.f32 %v4887_v7, %v648_v23 }
 0x14f   :  { %v885_v26 = vadd.f32 %v884_v24, %v883_v21  ;;  %v768_v28 = vmax.f32 %v654_v22, 0.0 }
 0x150   :  { %v767_v29 = vmax.f32 %v649_v25, 0.0  ;;  %v3894_v30 = vpop.f32.mrb[52].mxu0 }
 0x151   :  { %v887_v31 = vadd.f32 %v886_v27, %v885_v26  ;;  %v664_v32 = vadd.f32 %v3894_v30, %v4887_v7  ;;  %v658_v33 = vpop.f32.mrb[53].mxu0  ;;  %v890_v37 = vsel %vm781_vm2, %v768_v28, 0.0  ;;  %v846_v28 = vadd.f32 %v845_v17, %v4983_v0 }
 0x152   :  { %v888_v34 = vsel %vm781_vm2, %v767_v29, 0.0  ;;  %v659_v35 = vadd.f32 %v4887_v7, %v658_v33 }
 0x153   :  { %v889_v36 = vadd.f32 %v888_v34, %v887_v31  ;;  %v770_v38 = vmax.f32 %v664_v32, 0.0 }
 0x154   :  { %v769_v40 = vmax.f32 %v659_v35, 0.0  ;;  %v3897_v41 = vpop.f32.mrb[54].mxu0  ;;  %v847_v35 = vrot.slane %v846_v28, 2 }
 0x155   :  { %v891_v42 = vadd.f32 %v890_v37, %v889_v36  ;;  %v674_v43 = vadd.f32 %v3897_v41, %v4887_v7  ;;  %v668_v44 = vpop.f32.mrb[55].mxu0  ;;  %v894_v50 = vsel %vm781_vm2, %v770_v38, 0.0 }
 0x156   :  { %v892_v45 = vsel %vm781_vm2, %v769_v40, 0.0  ;;  %v669_v46 = vadd.f32 %v4887_v7, %v668_v44  ;;  %v848_v40 = vadd.f32 %v847_v35, %v846_v28 }
 0x157   :  { %v893_v47 = vadd.f32 %v892_v45, %v891_v42  ;;  %v772_v51 = vmax.f32 %v674_v43, 0.0 }
 0x158   :  { %v771_v52 = vmax.f32 %v669_v46, 0.0  ;;  %v3900_v53 = vpop.f32.mrb[56].mxu0 }
 0x159   :  { %v895_v54 = vadd.f32 %v894_v50, %v893_v47  ;;  %v684_v55 = vadd.f32 %v3900_v53, %v4887_v7  ;;  %v678_v56 = vpop.f32.mrb[57].mxu0  ;;  %v898_v60 = vsel %vm781_vm2, %v772_v51, 0.0  ;;  %v1011_v47 = vld [vmem:[%s5474_s6 + $0x10] sm:$0xff]  ;;  %v1012_v50 = vld [vmem:[%s5474_s6 + $0x18] sm:$0xff] }
 0x15a   :  { %v896_v57 = vsel %vm781_vm2, %v771_v52, 0.0  ;;  %v679_v58 = vadd.f32 %v4887_v7, %v678_v56  ;;  %v5055_v53 = vpack.c.bf16 %v1012_v50, %v1011_v47  ;;  %v1013_v56 = vld [vmem:[%s5476_s7] sm:$0xff] }
 0x15b   :  { %v897_v59 = vadd.f32 %v896_v57, %v895_v54  ;;  %v774_v61 = vmax.f32 %v684_v55, 0.0  ;;  %v1027_v54 = vld [vmem:[%s5475_s5] sm:$0xff]  ;;  %v1014_v57 = vld [vmem:[%s5476_s7 + $0x8] sm:$0xff] }
 0x15c   :  { %v773_v62 = vmax.f32 %v679_v58, 0.0  ;;  %v3903_v63 = vpop.f32.mrb[58].mxu0  ;;  %v1028_v58 = vld [vmem:[%s5475_s5 + $0x8] sm:$0xff] }
 0x15d   :  { %v899_v1 = vadd.f32 %v898_v60, %v897_v59  ;;  %v694_v2 = vadd.f32 %v3903_v63, %v4887_v7  ;;  %v688_v3 = vpop.f32.mrb[59].mxu0  ;;  %v902_v8 = vsel %vm781_vm2, %v774_v61, 0.0  ;;  %v5075_v59 = vpack.c.bf16 %v1014_v57, %v1013_v56  ;;  %v1015_v60 = vld [vmem:[%s5476_s7 + $0x10] sm:$0xff]  ;;  %v1016_v61 = vld [vmem:[%s5476_s7 + $0x18] sm:$0xff] }
 0x15e   :  { %v900_v4 = vsel %vm781_vm2, %v773_v62, 0.0  ;;  %v689_v5 = vadd.f32 %v4887_v7, %v688_v3  ;;  %v5086_v62 = vpack.c.bf16 %v1016_v61, %v1015_v60 }
 0x15f   :  { %v901_v6 = vadd.f32 %v900_v4, %v899_v1  ;;  %v776_v9 = vmax.f32 %v694_v2, 0.0  ;;  %v5107_v4 = vld [vmem:[%s5477_s8] ss:$0 sm:$0xff] }
 0x160   :  { %v775_v10 = vmax.f32 %v689_v5, 0.0  ;;  %v3906_v11 = vpop.f32.mrb[60].mxu0 }
 0x161   :  { %v903_v12 = vadd.f32 %v902_v8, %v901_v6  ;;  %v704_v13 = vadd.f32 %v3906_v11, %v4887_v7  ;;  %v698_v14 = vpop.f32.mrb[61].mxu0  ;;  %v906_v19 = vsel %vm781_vm2, %v776_v9, 0.0 }
 0x162   :  { %v904_v15 = vsel %vm781_vm2, %v775_v10, 0.0  ;;  %v699_v16 = vadd.f32 %v4887_v7, %v698_v14 }
 0x163   :  { %v905_v18 = vadd.f32 %v904_v15, %v903_v12  ;;  %v778_v20 = vmax.f32 %v704_v13, 0.0 }
 0x164   :  { %v777_v21 = vmax.f32 %v699_v16, 0.0  ;;  %v3909_v22 = vpop.f32.mrb[62].mxu0 }
 0x165   :  { %v907_v23 = vadd.f32 %v906_v19, %v905_v18  ;;  %v714_v24 = vadd.f32 %v3909_v22, %v4887_v7  ;;  %v708_v25 = vpop.f32.mrb[63].mxu0  ;;  %v910_v30 = vsel %vm781_vm2, %v778_v20, 0.0 }
 0x166   :  { %v908_v26 = vsel %vm781_vm2, %v777_v21, 0.0  ;;  %v709_v27 = vadd.f32 %v4887_v7, %v708_v25  ;;  %v849_v7 = vrot.slane %v848_v40, 1 }
 0x167   :  { %v909_v29 = vadd.f32 %v908_v26, %v907_v23  ;;  %v780_v31 = vmax.f32 %v714_v24, 0.0 }
 0x168   :  { %v779_v32 = vmax.f32 %v709_v27, 0.0  ;;  %v850_v0 = vadd.f32 %v849_v7, %v848_v40 }
 0x169   :  { %v911_v33 = vadd.f32 %v910_v30, %v909_v29  ;;  %v914_v37 = vsel %vm781_vm2, %v780_v31, 0.0 }
 0x16a   :  { %v912_v34 = vsel %vm781_vm2, %v779_v32, 0.0  ;;  %v852_v51 = vmul.f32 0.00390625, %v850_v0 }
 0x16b   :  { %v913_v36 = vadd.f32 %v912_v34, %v911_v33 }
 0x16d   :  { %v915_v38 = vadd.f32 %v914_v37, %v913_v36 }
 0x16f   :  { %v916_v41 = vrot.slane %v915_v38, 4 }
 0x171   :  { %v917_v42 = vadd.f32 %v916_v41, %v915_v38 }
 0x173   :  { %v918_v43 = vrot.slane %v917_v42, 2 }
 0x175   :  { %v919_v44 = vadd.f32 %v918_v43, %v917_v42 }
 0x177   :  { %v920_v45 = vrot.slane %v919_v44, 1 }
 0x179   :  { %v921_v46 = vadd.f32 %v920_v45, %v919_v44 }
 0x17b   :  { %v922_v52 = vmul.f32 0.00390625, %v921_v46 }
 0x17d   :  { %v924_v55 = vsel %vm923_vm4, %v852_v51, %v922_v52 }
 0x17e   :  { %3919 = vmatmul.mubr.msk.f32.vlgmr.msra.gmra.mrb[0].mxu1 %vm781_vm2, %v924_v55 }
 0x17f   :  { %4202 = vmatpush3.bf16.msra.mxu1 %v4925_v49  ;;  %3929 = vmatprep.mubr.msk.f32.mxu1 %vm781_vm2, %v1027_v54 }
 0x180   :  { %4204 = vmatprep.subr.bf16.mxu1 %v5055_v53 }
 0x183   :  { %4206 = vmatpush3.bf16.msra.mxu1 %v5055_v53 }
 0x184   :  { %4207 = vmatprep.subr.bf16.mxu1 %v4510_v39 }
 0x186   :  { %3930 = vmatmul.mubr.msk.f32.vlgmr.msra.gmra.mrb[2].mxu1 %vm781_vm2, %v1028_v58 }
 0x187   :  { %4209 = vmatpush3.bf16.msra.mxu1 %v5075_v59  ;;  %3940 = vmatprep.mubr.msk.f32.mxu1 %vm4511_vm3, %v4512_v48 }
 0x188   :  { %4210 = vmatprep.subr.bf16.mxu1 %v4510_v39 }
 0x18b   :  { %4212 = vmatpush3.bf16.msra.mxu1 %v5086_v62 }
 0x18c   :  { %4213 = vmatprep.subr.bf16.mxu1 %v4510_v39 }
 0x18e   :  { %3941 = vmatmul.mubr.f32.vlgmr.msra.gmra.mrb[4].mxu1 %v4512_v48 }
 0x18f   :  { %4215 = vmatpush3.bf16.msra.mxu1 %v5075_v59  ;;  %3951 = vmatprep.mubr.msk.f32.mxu1 %vm4511_vm3, %v4512_v48 }
 0x190   :  { %4216 = vmatprep.subr.bf16.mxu1 %v4510_v39 }
 0x193   :  { %4218 = vmatpush3.bf16.msra.mxu1 %v5086_v62 }
 0x194   :  { %4219 = vmatprep.subr.bf16.mxu1 %v4510_v39 }
 0x251   :  { %v5100_v63 = vpop.f32.mrb[0].mxu1 }
 0x252   :  { %v3920_v1 = vpop.f32.mrb[1].mxu1 }
 0x259   :  { %v5102_v2 = vpop.f32.mrb[2].mxu1 }
 0x25a   :  { %v1107_v3 = vpop.f32.mrb[3].mxu1 }
 0x25b   :  { %v5110_v5 = vadd.f32 %v5107_v4, %v1107_v3 }
 0x261   :  { %v1185_v6 = vpop.f32.mrb[4].mxu1 }
 0x262   :  { %v1189_v8 = vadd.f32 %v1185_v6, %v5110_v5  ;;  %v3942_v9 = vpop.f32.mrb[5].mxu1 }
 0x264   :  { %4361 = vtanh.f32 %v1189_v8  ;;  %v3562_v11 = vmul.f32 -1.442695, %v1189_v8 }
 0x266   :  { %4363 = vpow2.f32 %v3562_v11 }
 0x26e   :  { %v4362_v10 = vpop.eup %4361 }
 0x26f   :  { %1199 = vrot.lane.b32.xlu0 %v4362_v10, %s4513_s25 }
 0x270   :  { %v4364_v12 = vpop.eup %4363 }
 0x271   :  { %v1193_v13 = vadd.f32 1.0, %v4364_v12 }
 0x273   :  { %4365 = vrcp.f32 %v1193_v13 }
 0x27d   :  { %v4366_v14 = vpop.eup %4365 }
 0x27e   :  { %v1197_v17 = vmul.f32 0.0, %v4366_v14 }
 0x2e1   :  { %v1200_v15 = vpop.permute.xlu0 %1199 }
 0x2e2   :  { %v1202_v16 = vmul.f32 %v4366_v14, %v1200_v15 }
 0x2e4   :  { %1204 = vrot.lane.b32.xlu0 %v1202_v16, %s4514_s3 }
 0x356   :  { %v1205_v18 = vpop.permute.xlu0 %1204 }
 0x357   :  { %v1207_v19 = vadd.f32 %v1205_v18, %v1197_v17 }
 0x359   :  { %4367 = vtanh.f32 %v1207_v19  ;;  %v1301_v35 = vrot.slane %v1207_v19, 6 }
 0x363   :  { %v4368_v20 = vpop.eup %4367 }
 0x364   :  { %1210 = vrot.lane.b32.xlu1 %v4368_v20, %s4513_s25 }
 0x3d6   :  { %v1211_v21 = vpop.permute.xlu1 %1210 }
 0x3d7   :  { %v5116_v22 = vmul.f32 %v4366_v14, %v1211_v21 }
 0x3d9   :  { %1215 = vrot.lane.b32.xlu1 %v5116_v22, %s4514_s3 }
 0x44b   :  { %v1216_v23 = vpop.permute.xlu1 %1215 }
 0x44c   :  { %3952 = vmatmul.mubr.msk.f32.vlgmr.msra.gmra.mrb[6].mxu1 %vm781_vm2, %v1216_v23 }
 0x44d   :  { %4221 = vmatpush3.bf16.msra.mxu1 %v5075_v59  ;;  %3962 = vmatprep.mubr.msk.f32.mxu1 %vm4511_vm3, %v4512_v48 }
 0x44e   :  { %4222 = vmatprep.subr.bf16.mxu1 %v4510_v39 }
 0x451   :  { %4224 = vmatpush3.bf16.msra.mxu1 %v5086_v62 }
 0x452   :  { %4225 = vmatprep.subr.bf16.mxu1 %v4510_v39 }
 0x51f   :  { %v1285_v24 = vpop.f32.mrb[6].mxu1 }
 0x520   :  { %v1290_v25 = vrot.slane %v1285_v24, 6  ;;  %v3953_v26 = vpop.f32.mrb[7].mxu1 }
 0x522   :  { %v1292_v27 = vadd.f32 %v1290_v25, %v5110_v5 }
 0x524   :  { %4369 = vtanh.f32 %v1292_v27  ;;  %v3564_v29 = vmul.f32 -1.442695, %v1292_v27 }
 0x526   :  { %4371 = vpow2.f32 %v3564_v29 }
 0x52e   :  { %v4370_v28 = vpop.eup %4369 }
 0x52f   :  { %1305 = vrot.lane.b32.xlu0 %v4370_v28, %s4513_s25 }
 0x530   :  { %v4372_v30 = vpop.eup %4371 }
 0x531   :  { %v1296_v31 = vadd.f32 1.0, %v4372_v30 }
 0x533   :  { %4373 = vrcp.f32 %v1296_v31 }
 0x53d   :  { %v4374_v32 = vpop.eup %4373 }
 0x53e   :  { %v1303_v36 = vmul.f32 %v4374_v32, %v1301_v35 }
 0x5a1   :  { %v1306_v33 = vpop.permute.xlu0 %1305 }
 0x5a2   :  { %v1308_v34 = vmul.f32 %v4374_v32, %v1306_v33 }
 0x5a4   :  { %1310 = vrot.lane.b32.xlu1 %v1308_v34, %s4514_s3 }
 0x616   :  { %v1311_v37 = vpop.permute.xlu1 %1310 }
 0x617   :  { %v1313_v38 = vadd.f32 %v1311_v37, %v1303_v36 }
 0x619   :  { %4375 = vtanh.f32 %v1313_v38  ;;  %v1408_v57 = vrot.slane %v1313_v38, 6 }
 0x623   :  { %v4376_v40 = vpop.eup %4375 }
 0x624   :  { %1316 = vrot.lane.b32.xlu0 %v4376_v40, %s4513_s25 }
 0x696   :  { %v1317_v41 = vpop.permute.xlu0 %1316 }
 0x697   :  { %v1319_v42 = vmul.f32 %v4374_v32, %v1317_v41  ;;  %v5171_v32 = vadd.f32 %v5102_v2, %v5107_v4 }
 0x699   :  { %v1321_v43 = vrot.slane %v1319_v42, 2  ;;  %v1959_v8 = vsel %vm1958_vm5, %v5116_v22, %v1319_v42 }
 0x69b   :  { %1322 = vrot.lane.b32.xlu1 %v1321_v43, %s4514_s3 }
 0x70d   :  { %v1323_v7 = vpop.permute.xlu1 %1322 }
 0x70e   :  { %3963 = vmatmul.mubr.msk.f32.vlgmr.msra.gmra.mrb[8].mxu1 %vm781_vm2, %v1323_v7 }
 0x70f   :  { %4227 = vmatpush3.bf16.msra.mxu1 %v5075_v59  ;;  %3973 = vmatprep.mubr.msk.f32.mxu1 %vm4511_vm3, %v4512_v48 }
 0x710   :  { %4228 = vmatprep.subr.bf16.mxu1 %v4510_v39 }
 0x713   :  { %4230 = vmatpush3.bf16.msra.mxu1 %v5086_v62 }
 0x714   :  { %4231 = vmatprep.subr.bf16.mxu1 %v4510_v39 }
 0x7e1   :  { %v1392_v44 = vpop.f32.mrb[8].mxu1 }
 0x7e2   :  { %v1397_v0 = vrot.slane %v1392_v44, 4  ;;  %v3964_v45 = vpop.f32.mrb[9].mxu1 }
 0x7e4   :  { %v1399_v46 = vadd.f32 %v1397_v0, %v5110_v5 }
 0x7e6   :  { %4377 = vtanh.f32 %v1399_v46  ;;  %v3566_v50 = vmul.f32 -1.442695, %v1399_v46 }
 0x7e8   :  { %4379 = vpow2.f32 %v3566_v50 }
 0x7f0   :  { %v4378_v47 = vpop.eup %4377 }
 0x7f1   :  { %1412 = vrot.lane.b32.xlu0 %v4378_v47, %s4513_s25 }
 0x7f2   :  { %v4380_v51 = vpop.eup %4379 }
 0x7f3   :  { %v1403_v52 = vadd.f32 1.0, %v4380_v51 }
 0x7f5   :  { %4381 = vrcp.f32 %v1403_v52 }
 0x7ff   :  { %v4382_v54 = vpop.eup %4381 }
 0x800   :  { %v1410_v58 = vmul.f32 %v4382_v54, %v1408_v57 }
 0x863   :  { %v1413_v55 = vpop.permute.xlu0 %1412 }
 0x864   :  { %v1415_v56 = vmul.f32 %v4382_v54, %v1413_v55 }
 0x866   :  { %1417 = vrot.lane.b32.xlu1 %v1415_v56, %s4514_s3 }
 0x8d8   :  { %v1418_v60 = vpop.permute.xlu1 %1417 }
 0x8d9   :  { %v1420_v61 = vadd.f32 %v1418_v60, %v1410_v58 }
 0x8db   :  { %4383 = vtanh.f32 %v1420_v61  ;;  %v1515_v23 = vrot.slane %v1420_v61, 6 }
 0x8e5   :  { %v4384_v1 = vpop.eup %4383 }
 0x8e6   :  { %1423 = vrot.lane.b32.xlu0 %v4384_v1, %s4513_s25 }
 0x958   :  { %v1424_v3 = vpop.permute.xlu0 %1423 }
 0x959   :  { %v1426_v6 = vmul.f32 %v4382_v54, %v1424_v3 }
 0x95b   :  { %v1428_v9 = vrot.slane %v1426_v6, 4  ;;  %v1960_v10 = vsel %vm328_vm1, %v1959_v8, %v1426_v6 }
 0x95d   :  { %1429 = vrot.lane.b32.xlu1 %v1428_v9, %s4514_s3 }
 0x9cf   :  { %v1430_v11 = vpop.permute.xlu1 %1429 }
 0x9d0   :  { %3974 = vmatmul.mubr.msk.f32.vlgmr.msra.gmra.mrb[10].mxu1 %vm781_vm2, %v1430_v11 }
 0x9d1   :  { %4233 = vmatpush3.bf16.msra.mxu1 %v5075_v59  ;;  %3984 = vmatprep.mubr.msk.f32.mxu1 %vm4511_vm3, %v4512_v48 }
 0x9d2   :  { %4234 = vmatprep.subr.bf16.mxu1 %v4510_v39 }
 0x9d5   :  { %4236 = vmatpush3.bf16.msra.mxu1 %v5086_v62 }
 0x9d6   :  { %4237 = vmatprep.subr.bf16.mxu1 %v4510_v39 }
 0xaa3   :  { %v1499_v12 = vpop.f32.mrb[10].mxu1 }
 0xaa4   :  { %v1504_v13 = vrot.slane %v1499_v12, 2  ;;  %v3975_v14 = vpop.f32.mrb[11].mxu1 }
 0xaa6   :  { %v1506_v15 = vadd.f32 %v1504_v13, %v5110_v5 }
 0xaa8   :  { %4385 = vtanh.f32 %v1506_v15  ;;  %v3568_v17 = vmul.f32 -1.442695, %v1506_v15 }
 0xaaa   :  { %4387 = vpow2.f32 %v3568_v17 }
 0xab2   :  { %v4386_v16 = vpop.eup %4385 }
 0xab3   :  { %1519 = vrot.lane.b32.xlu0 %v4386_v16, %s4513_s25 }
 0xab4   :  { %v4388_v18 = vpop.eup %4387 }
 0xab5   :  { %v1510_v19 = vadd.f32 1.0, %v4388_v18 }
 0xab7   :  { %4389 = vrcp.f32 %v1510_v19 }
 0xac1   :  { %v4390_v20 = vpop.eup %4389 }
 0xac2   :  { %v1517_v24 = vmul.f32 %v4390_v20, %v1515_v23 }
 0xb25   :  { %v1520_v21 = vpop.permute.xlu0 %1519 }
 0xb26   :  { %v1522_v22 = vmul.f32 %v4390_v20, %v1520_v21 }
 0xb28   :  { %1524 = vrot.lane.b32.xlu1 %v1522_v22, %s4514_s3 }
 0xb9a   :  { %v1525_v25 = vpop.permute.xlu1 %1524 }
 0xb9b   :  { %v1527_v26 = vadd.f32 %v1525_v25, %v1517_v24 }
 0xb9d   :  { %4391 = vtanh.f32 %v1527_v26  ;;  %v1619_v2 = vrot.slane %v1527_v26, 6 }
 0xba7   :  { %v4392_v5 = vpop.eup %4391 }
 0xba8   :  { %1530 = vrot.lane.b32.xlu0 %v4392_v5, %s4513_s25 }
 0xc1a   :  { %v1531_v27 = vpop.permute.xlu0 %1530 }
 0xc1b   :  { %v1533_v28 = vmul.f32 %v4390_v20, %v1531_v27 }
 0xc1d   :  { %v1535_v29 = vrot.slane %v1533_v28, 6  ;;  %v5159_v30 = vsel %vm1961_vm6, %v1960_v10, %v1533_v28 }
 0xc1f   :  { %1536 = vrot.lane.b32.xlu1 %v1535_v29, %s4514_s3 }
 0xc91   :  { %v1537_v31 = vpop.permute.xlu1 %1536 }
 0xc92   :  { %3985 = vmatmul.mubr.msk.f32.vlgmr.msra.gmra.mrb[12].mxu1 %vm781_vm2, %v1537_v31 }
 0xc93   :  { %4239 = vmatpush3.bf16.msra.mxu1 %v5075_v59  ;;  %3995 = vmatprep.mubr.msk.f32.mxu1 %vm4511_vm3, %v4512_v48 }
 0xc94   :  { %4240 = vmatprep.subr.bf16.mxu1 %v4510_v39 }
 0xc97   :  { %4242 = vmatpush3.bf16.msra.mxu1 %v5086_v62 }
 0xc98   :  { %4243 = vmatprep.subr.bf16.mxu1 %v4510_v39 }
 0xd65   :  { %v1606_v33 = vpop.f32.mrb[12].mxu1 }
 0xd66   :  { %v1610_v34 = vadd.f32 %v1606_v33, %v5171_v32  ;;  %v3986_v35 = vpop.f32.mrb[13].mxu1 }
 0xd68   :  { %4393 = vtanh.f32 %v1610_v34  ;;  %v3570_v37 = vmul.f32 -1.442695, %v1610_v34 }
 0xd6a   :  { %4395 = vpow2.f32 %v3570_v37 }
 0xd72   :  { %v4394_v36 = vpop.eup %4393 }
 0xd73   :  { %1623 = vrot.lane.b32.xlu0 %v4394_v36, %s4513_s25 }
 0xd74   :  { %v4396_v38 = vpop.eup %4395 }
 0xd75   :  { %v1614_v40 = vadd.f32 1.0, %v4396_v38 }
 0xd77   :  { %4397 = vrcp.f32 %v1614_v40 }
 0xd81   :  { %v4398_v41 = vpop.eup %4397 }
 0xd82   :  { %v1621_v4 = vmul.f32 %v4398_v41, %v1619_v2 }
 0xde5   :  { %v1624_v42 = vpop.permute.xlu0 %1623 }
 0xde6   :  { %v1626_v43 = vmul.f32 %v4398_v41, %v1624_v42 }
 0xde8   :  { %1628 = vrot.lane.b32.xlu1 %v1626_v43, %s4514_s3 }
 0xe5a   :  { %v1629_v7 = vpop.permute.xlu1 %1628 }
 0xe5b   :  { %v1631_v44 = vadd.f32 %v1629_v7, %v1621_v4 }
 0xe5d   :  { %4399 = vtanh.f32 %v1631_v44  ;;  %v1725_v3 = vrot.slane %v1631_v44, 6 }
 0xe67   :  { %v4400_v0 = vpop.eup %4399 }
 0xe68   :  { %1634 = vrot.lane.b32.xlu0 %v4400_v0, %s4513_s25 }
 0xeda   :  { %v1635_v45 = vpop.permute.xlu0 %1634 }
 0xedb   :  { %v5177_v46 = vmul.f32 %v4398_v41, %v1635_v45 }
 0xedd   :  { %1639 = vrot.lane.b32.xlu1 %v5177_v46, %s4514_s3 }
 0xf4f   :  { %v1640_v47 = vpop.permute.xlu1 %1639 }
 0xf50   :  { %3996 = vmatmul.mubr.msk.f32.vlgmr.msra.gmra.mrb[14].mxu1 %vm781_vm2, %v1640_v47 }
 0xf51   :  { %4245 = vmatpush3.bf16.msra.mxu1 %v5075_v59  ;;  %4006 = vmatprep.mubr.msk.f32.mxu1 %vm4511_vm3, %v4512_v48 }
 0xf52   :  { %4246 = vmatprep.subr.bf16.mxu1 %v4510_v39 }
 0xf55   :  { %4248 = vmatpush3.bf16.msra.mxu1 %v5086_v62 }
 0xf56   :  { %4249 = vmatprep.subr.bf16.mxu1 %v4510_v39 }
0x1023   :  { %v1709_v50 = vpop.f32.mrb[14].mxu1 }
0x1024   :  { %v1714_v51 = vrot.slane %v1709_v50, 6  ;;  %v3997_v52 = vpop.f32.mrb[15].mxu1 }
0x1025   :  { %v1018_v52 = vld [vmem:[%s5478_s9] sm:$0xff] }
0x1026   :  { %v1716_v54 = vadd.f32 %v1714_v51, %v5171_v32 }
0x1028   :  { %4401 = vtanh.f32 %v1716_v54  ;;  %v3572_v56 = vmul.f32 -1.442695, %v1716_v54  ;;  %v1019_v54 = vld [vmem:[%s5478_s9 + $0x8] sm:$0xff] }
0x102a   :  { %4403 = vpow2.f32 %v3572_v56  ;;  %v1021_v56 = vld [vmem:[%s5478_s9 + $0x18] sm:$0xff] }
0x1032   :  { %v4402_v55 = vpop.eup %4401 }
0x1033   :  { %1729 = vrot.lane.b32.xlu0 %v4402_v55, %s4513_s25  ;;  %v5226_v55 = vpack.c.bf16 %v1019_v54, %v1018_v52 }
0x1034   :  { %v4404_v57 = vpop.eup %4403 }
0x1035   :  { %v1720_v58 = vadd.f32 1.0, %v4404_v57 }
0x1037   :  { %4405 = vrcp.f32 %v1720_v58 }
0x1041   :  { %v4406_v60 = vpop.eup %4405 }
0x1042   :  { %v1727_v6 = vmul.f32 %v4406_v60, %v1725_v3  ;;  %v1024_v3 = vld [vmem:[%s5479_s10 + $0x10] sm:$0xff] }
0x10a5   :  { %v1730_v61 = vpop.permute.xlu0 %1729 }
0x10a6   :  { %v1732_v1 = vmul.f32 %v4406_v60, %v1730_v61  ;;  %v1023_v61 = vld [vmem:[%s5479_s10 + $0x8] sm:$0xff] }
0x10a8   :  { %1734 = vrot.lane.b32.xlu1 %v1732_v1, %s4514_s3 }
0x111a   :  { %v1735_v8 = vpop.permute.xlu1 %1734 }
0x111b   :  { %v1737_v9 = vadd.f32 %v1735_v8, %v1727_v6  ;;  %v1025_v6 = vld [vmem:[%s5479_s10 + $0x18] sm:$0xff] }
0x111c   :  { %v5255_v8 = vpack.c.bf16 %v1025_v6, %v1024_v3 }
0x111d   :  { %4407 = vtanh.f32 %v1737_v9  ;;  %v1832_v26 = vrot.slane %v1737_v9, 6 }
0x1127   :  { %v4408_v10 = vpop.eup %4407 }
0x1128   :  { %1740 = vrot.lane.b32.xlu0 %v4408_v10, %s4513_s25 }
0x119a   :  { %v1741_v11 = vpop.permute.xlu0 %1740 }
0x119b   :  { %v1743_v12 = vmul.f32 %v4406_v60, %v1741_v11  ;;  %v1022_v60 = vld [vmem:[%s5479_s10] sm:$0xff] }
0x119c   :  { %v5245_v1 = vpack.c.bf16 %v1023_v61, %v1022_v60 }
0x119d   :  { %v1745_v13 = vrot.slane %v1743_v12, 2  ;;  %v1963_v34 = vsel %vm1958_vm5, %v5177_v46, %v1743_v12 }
0x119e   :  { %4301 = vmatpush3.bf16.msra.mxu0 %v5245_v1 }
0x119f   :  { %1746 = vrot.lane.b32.xlu1 %v1745_v13, %s4514_s3  ;;  %4302 = vmatprep.subr.bf16.mxu0 %v4510_v39 }
0x11a2   :  { %4304 = vmatpush3.bf16.msra.mxu0 %v5255_v8 }
0x11a3   :  { %4311 = vmatprep.subr.bf16.mxu0 %v4510_v39 }
0x1211   :  { %v1747_v14 = vpop.permute.xlu1 %1746 }
0x1212   :  { %4007 = vmatmul.mubr.msk.f32.vlgmr.msra.gmra.mrb[16].mxu1 %vm781_vm2, %v1747_v14 }
0x1213   :  { %4251 = vmatpush3.bf16.msra.mxu1 %v5075_v59  ;;  %4017 = vmatprep.mubr.msk.f32.mxu1 %vm4511_vm3, %v4512_v48 }
0x1214   :  { %4252 = vmatprep.subr.bf16.mxu1 %v4510_v39 }
0x1217   :  { %4254 = vmatpush3.bf16.msra.mxu1 %v5086_v62 }
0x1218   :  { %4256 = vmatprep.subr.bf16.mxu1 %v5226_v55 }
0x12e5   :  { %v1816_v15 = vpop.f32.mrb[16].mxu1 }
0x12e6   :  { %v1821_v16 = vrot.slane %v1816_v15, 4  ;;  %v4008_v17 = vpop.f32.mrb[17].mxu1  ;;  %v5283_v15 = vld [vmem:[%s5480_s11] ss:$0 sm:$0xff] }
0x12e8   :  { %v1823_v18 = vadd.f32 %v1821_v16, %v5171_v32 }
0x12ea   :  { %4409 = vtanh.f32 %v1823_v18  ;;  %v3574_v20 = vmul.f32 -1.442695, %v1823_v18 }
0x12ec   :  { %4411 = vpow2.f32 %v3574_v20 }
0x12f4   :  { %v4410_v19 = vpop.eup %4409 }
0x12f5   :  { %1836 = vrot.lane.b32.xlu0 %v4410_v19, %s4513_s25 }
0x12f6   :  { %v4412_v21 = vpop.eup %4411 }
0x12f7   :  { %v1827_v22 = vadd.f32 1.0, %v4412_v21 }
0x12f9   :  { %4413 = vrcp.f32 %v1827_v22 }
0x1303   :  { %v4414_v23 = vpop.eup %4413 }
0x1304   :  { %v1834_v5 = vmul.f32 %v4414_v23, %v1832_v26 }
0x1367   :  { %v1837_v24 = vpop.permute.xlu0 %1836 }
0x1368   :  { %v1839_v25 = vmul.f32 %v4414_v23, %v1837_v24 }
0x136a   :  { %1841 = vrot.lane.b32.xlu1 %v1839_v25, %s4514_s3 }
0x13dc   :  { %v1842_v27 = vpop.permute.xlu1 %1841 }
0x13dd   :  { %v1844_v28 = vadd.f32 %v1842_v27, %v1834_v5 }
0x13df   :  { %4415 = vtanh.f32 %v1844_v28  ;;  %v1939_v46 = vrot.slane %v1844_v28, 6 }
0x13e9   :  { %v4416_v29 = vpop.eup %4415 }
0x13ea   :  { %1847 = vrot.lane.b32.xlu0 %v4416_v29, %s4513_s25 }
0x145c   :  { %v1848_v31 = vpop.permute.xlu0 %1847 }
0x145d   :  { %v1850_v33 = vmul.f32 %v4414_v23, %v1848_v31 }
0x145f   :  { %v1852_v35 = vrot.slane %v1850_v33, 4  ;;  %v1964_v36 = vsel %vm328_vm1, %v1963_v34, %v1850_v33 }
0x1461   :  { %1853 = vrot.lane.b32.xlu1 %v1852_v35, %s4514_s3 }
0x14d3   :  { %v1854_v37 = vpop.permute.xlu1 %1853 }
0x14d4   :  { %4018 = vmatmul.mubr.msk.f32.vlgmr.msra.gmra.mrb[18].mxu1 %vm781_vm2, %v1854_v37 }
0x14d5   :  { %4258 = vmatpush3.bf16.msra.mxu1 %v5226_v55 }
0x15a7   :  { %v1923_v38 = vpop.f32.mrb[18].mxu1 }
0x15a8   :  { %v1928_v40 = vrot.slane %v1923_v38, 2  ;;  %v4019_v41 = vpop.f32.mrb[19].mxu1 }
0x15aa   :  { %v1930_v42 = vadd.f32 %v1928_v40, %v5171_v32 }
0x15ac   :  { %4417 = vtanh.f32 %v1930_v42  ;;  %v3576_v2 = vmul.f32 -1.442695, %v1930_v42 }
0x15ae   :  { %4419 = vpow2.f32 %v3576_v2 }
0x15b6   :  { %v4418_v43 = vpop.eup %4417 }
0x15b7   :  { %1943 = vrot.lane.b32.xlu0 %v4418_v43, %s4513_s25 }
0x15b8   :  { %v4420_v4 = vpop.eup %4419 }
0x15b9   :  { %v1934_v7 = vadd.f32 1.0, %v4420_v4 }
0x15bb   :  { %4421 = vrcp.f32 %v1934_v7 }
0x15c5   :  { %v4422_v44 = vpop.eup %4421 }
0x15c6   :  { %v1941_v47 = vmul.f32 %v4422_v44, %v1939_v46 }
0x1629   :  { %v1944_v0 = vpop.permute.xlu0 %1943 }
0x162a   :  { %v1946_v45 = vmul.f32 %v4422_v44, %v1944_v0 }
0x162c   :  { %1948 = vrot.lane.b32.xlu1 %v1946_v45, %s4514_s3 }
0x1630   :  { %1974 = vrot.lane.b32.xlu1 %v5159_v30, %s4514_s3  ;;  %v1020_v30 = vld [vmem:[%s5478_s9 + $0x10] sm:$0xff] }
0x1631   :  { %v5231_v57 = vpack.c.bf16 %v1021_v56, %v1020_v30 }
0x1633   :  { %4260 = vmatprep.subr.bf16.mxu1 %v5231_v57 }
0x1634   :  { %4262 = vmatpush3.bf16.msra.mxu1 %v5231_v57 }
0x1635   :  { %4263 = vmatprep.subr.bf16.mxu1 %v4510_v39 }
0x169e   :  { %v1949_v32 = vpop.permute.xlu1 %1948 }
0x169f   :  { %v5213_v50 = vadd.f32 %v1949_v32, %v1941_v47 }
0x16a1   :  { %4423 = vtanh.f32 %v5213_v50 }
0x16a2   :  { %v1975_v51 = vpop.permute.xlu1 %1974 }
0x16a3   :  { %4028 = vmatprep.mubr.msk.f32.mxu1 %vm781_vm2, %v1975_v51 }
0x16ab   :  { %v4424_v58 = vpop.eup %4423 }
0x16ac   :  { %1954 = vrot.lane.b32.xlu0 %v4424_v58, %s4513_s25 }
0x171e   :  { %v1955_v9 = vpop.permute.xlu0 %1954 }
0x171f   :  { %v5259_v10 = vmul.f32 %v4422_v44, %v1955_v9 }
0x1721   :  { %v1965_v11 = vsel %vm1961_vm6, %v1964_v36, %v5259_v10 }
0x1722   :  { %1976 = vrot.lane.b32.xlu0 %v1965_v11, %s4514_s3 }
0x1794   :  { %v1977_v12 = vpop.permute.xlu0 %1976 }
0x1795   :  { %4029 = vmatmul.mubr.msk.f32.vlgmr.msra.gmra.mrb[20].mxu1 %vm781_vm2, %v1977_v12 }
0x1796   :  { %4265 = vmatpush3.bf16.msra.mxu1 %v5245_v1  ;;  %4039 = vmatprep.mubr.msk.f32.mxu1 %vm4511_vm3, %v4512_v48 }
0x1797   :  { %4266 = vmatprep.subr.bf16.mxu1 %v4510_v39 }
0x179a   :  { %4268 = vmatpush3.bf16.msra.mxu1 %v5255_v8 }
0x179b   :  { %4269 = vmatprep.subr.bf16.mxu1 %v4510_v39 }
0x179d   :  { %4040 = vmatmul.mubr.f32.vlgmr.msra.gmra.mrb[22].mxu1 %v4512_v48 }
0x179e   :  { %4271 = vmatpush3.bf16.msra.mxu1 %v5245_v1  ;;  %4050 = vmatprep.mubr.msk.f32.mxu1 %vm4511_vm3, %v4512_v48 }
0x179f   :  { %4272 = vmatprep.subr.bf16.mxu1 %v4510_v39 }
0x17a2   :  { %4274 = vmatpush3.bf16.msra.mxu1 %v5255_v8 }
0x17a3   :  { %4275 = vmatprep.subr.bf16.mxu1 %v4510_v39 }
0x1868   :  { %v5278_v13 = vpop.f32.mrb[20].mxu1 }
0x1869   :  { %v2048_v14 = vpop.f32.mrb[21].mxu1 }
0x186a   :  { %v5286_v16 = vadd.f32 %v5283_v15, %v2048_v14 }
0x1870   :  { %v2123_v17 = vpop.f32.mrb[22].mxu1 }
0x1871   :  { %v2127_v18 = vadd.f32 %v2123_v17, %v5286_v16  ;;  %v4041_v19 = vpop.f32.mrb[23].mxu1 }
0x1873   :  { %4425 = vtanh.f32 %v2127_v18  ;;  %v3580_v21 = vmul.f32 -1.442695, %v2127_v18 }
0x1875   :  { %4427 = vpow2.f32 %v3580_v21 }
0x187d   :  { %v4426_v20 = vpop.eup %4425 }
0x187e   :  { %2137 = vrot.lane.b32.xlu1 %v4426_v20, %s4513_s25 }
0x187f   :  { %v4428_v22 = vpop.eup %4427 }
0x1880   :  { %v2131_v23 = vadd.f32 1.0, %v4428_v22 }
0x1882   :  { %4429 = vrcp.f32 %v2131_v23 }
0x188c   :  { %v4430_v24 = vpop.eup %4429 }
0x188d   :  { %v2135_v5 = vmul.f32 0.0, %v4430_v24 }
0x18f0   :  { %v2138_v25 = vpop.permute.xlu1 %2137 }
0x18f1   :  { %v2140_v26 = vmul.f32 %v4430_v24, %v2138_v25 }
0x18f3   :  { %2142 = vrot.lane.b32.xlu0 %v2140_v26, %s4514_s3 }
0x1965   :  { %v2143_v27 = vpop.permute.xlu0 %2142 }
0x1966   :  { %v2145_v28 = vadd.f32 %v2143_v27, %v2135_v5 }
0x1968   :  { %4431 = vtanh.f32 %v2145_v28  ;;  %v2239_v44 = vrot.slane %v2145_v28, 6 }
0x1972   :  { %v4432_v29 = vpop.eup %4431 }
0x1973   :  { %2148 = vrot.lane.b32.xlu1 %v4432_v29, %s4513_s25 }
0x19e5   :  { %v2149_v31 = vpop.permute.xlu1 %2148 }
0x19e6   :  { %v2151_v33 = vmul.f32 %v4430_v24, %v2149_v31 }
0x19e8   :  { %2153 = vrot.lane.b32.xlu0 %v2151_v33, %s4514_s3 }
0x1a5a   :  { %v2154_v34 = vpop.permute.xlu0 %2153 }
0x1a5b   :  { %4051 = vmatmul.mubr.msk.f32.vlgmr.msra.gmra.mrb[24].mxu1 %vm781_vm2, %v2154_v34 }
0x1a5c   :  { %4277 = vmatpush3.bf16.msra.mxu1 %v5245_v1  ;;  %4061 = vmatprep.mubr.msk.f32.mxu1 %vm4511_vm3, %v4512_v48 }
0x1a5d   :  { %4278 = vmatprep.subr.bf16.mxu1 %v4510_v39 }
0x1a60   :  { %4280 = vmatpush3.bf16.msra.mxu1 %v5255_v8 }
0x1a61   :  { %4281 = vmatprep.subr.bf16.mxu1 %v4510_v39 }
0x1b2e   :  { %v2223_v35 = vpop.f32.mrb[24].mxu1 }
0x1b2f   :  { %v2228_v36 = vrot.slane %v2223_v35, 6  ;;  %v4052_v37 = vpop.f32.mrb[25].mxu1 }
0x1b31   :  { %v2230_v38 = vadd.f32 %v2228_v36, %v5286_v16 }
0x1b33   :  { %4433 = vtanh.f32 %v2230_v38  ;;  %v3582_v41 = vmul.f32 -1.442695, %v2230_v38 }
0x1b35   :  { %4435 = vpow2.f32 %v3582_v41 }
0x1b3d   :  { %v4434_v40 = vpop.eup %4433 }
0x1b3e   :  { %2243 = vrot.lane.b32.xlu1 %v4434_v40, %s4513_s25 }
0x1b3f   :  { %v4436_v42 = vpop.eup %4435 }
0x1b40   :  { %v2234_v43 = vadd.f32 1.0, %v4436_v42 }
0x1b42   :  { %4437 = vrcp.f32 %v2234_v43 }
0x1b4c   :  { %v4438_v2 = vpop.eup %4437 }
0x1b4d   :  { %v2241_v0 = vmul.f32 %v4438_v2, %v2239_v44  ;;  %v5338_v44 = vadd.f32 %v5278_v13, %v5283_v15 }
0x1bb0   :  { %v2244_v4 = vpop.permute.xlu1 %2243 }
0x1bb1   :  { %v2246_v7 = vmul.f32 %v4438_v2, %v2244_v4 }
0x1bb3   :  { %2248 = vrot.lane.b32.xlu0 %v2246_v7, %s4514_s3 }
0x1c25   :  { %v2249_v45 = vpop.permute.xlu0 %2248 }
0x1c26   :  { %v2251_v46 = vadd.f32 %v2249_v45, %v2241_v0 }
0x1c28   :  { %4439 = vtanh.f32 %v2251_v46  ;;  %v2346_v17 = vrot.slane %v2251_v46, 6 }
0x1c32   :  { %v4440_v47 = vpop.eup %4439 }
0x1c33   :  { %2254 = vrot.lane.b32.xlu1 %v4440_v47, %s4513_s25 }
0x1ca5   :  { %v2255_v32 = vpop.permute.xlu1 %2254 }
0x1ca6   :  { %v2257_v51 = vmul.f32 %v4438_v2, %v2255_v32 }
0x1ca8   :  { %v2259_v52 = vrot.slane %v2257_v51, 2 }
0x1caa   :  { %2260 = vrot.lane.b32.xlu0 %v2259_v52, %s4514_s3 }
0x1d1c   :  { %v2261_v54 = vpop.permute.xlu0 %2260 }
0x1d1d   :  { %4062 = vmatmul.mubr.msk.f32.vlgmr.msra.gmra.mrb[26].mxu1 %vm781_vm2, %v2261_v54 }
0x1d1e   :  { %4283 = vmatpush3.bf16.msra.mxu1 %v5245_v1  ;;  %4072 = vmatprep.mubr.msk.f32.mxu1 %vm4511_vm3, %v4512_v48 }
0x1d1f   :  { %4284 = vmatprep.subr.bf16.mxu1 %v4510_v39 }
0x1d22   :  { %4286 = vmatpush3.bf16.msra.mxu1 %v5255_v8 }
0x1d23   :  { %4287 = vmatprep.subr.bf16.mxu1 %v4510_v39 }
0x1df0   :  { %v2330_v30 = vpop.f32.mrb[26].mxu1 }
0x1df1   :  { %v2335_v56 = vrot.slane %v2330_v30, 4  ;;  %v4063_v58 = vpop.f32.mrb[27].mxu1 }
0x1df3   :  { %v2337_v60 = vadd.f32 %v2335_v56, %v5286_v16 }
0x1df5   :  { %4441 = vtanh.f32 %v2337_v60  ;;  %v3584_v3 = vmul.f32 -1.442695, %v2337_v60 }
0x1df7   :  { %4443 = vpow2.f32 %v3584_v3 }
0x1dff   :  { %v4442_v61 = vpop.eup %4441 }
0x1e00   :  { %2350 = vrot.lane.b32.xlu1 %v4442_v61, %s4513_s25 }
0x1e01   :  { %v4444_v6 = vpop.eup %4443 }
0x1e02   :  { %v2341_v9 = vadd.f32 1.0, %v4444_v6 }
0x1e04   :  { %4445 = vrcp.f32 %v2341_v9 }
0x1e0e   :  { %v4446_v11 = vpop.eup %4445 }
0x1e0f   :  { %v2348_v18 = vmul.f32 %v4446_v11, %v2346_v17 }
0x1e72   :  { %v2351_v12 = vpop.permute.xlu1 %2350 }
0x1e73   :  { %v2353_v14 = vmul.f32 %v4446_v11, %v2351_v12 }
0x1e75   :  { %2355 = vrot.lane.b32.xlu0 %v2353_v14, %s4514_s3 }
0x1ee7   :  { %v2356_v19 = vpop.permute.xlu0 %2355 }
0x1ee8   :  { %v2358_v20 = vadd.f32 %v2356_v19, %v2348_v18 }
0x1eea   :  { %4447 = vtanh.f32 %v2358_v20  ;;  %v2453_v38 = vrot.slane %v2358_v20, 6 }
0x1ef4   :  { %v4448_v21 = vpop.eup %4447 }
0x1ef5   :  { %2361 = vrot.lane.b32.xlu1 %v4448_v21, %s4513_s25 }
0x1f67   :  { %v2362_v22 = vpop.permute.xlu1 %2361 }
0x1f68   :  { %v2364_v23 = vmul.f32 %v4446_v11, %v2362_v22 }
0x1f6a   :  { %v2366_v24 = vrot.slane %v2364_v23, 4 }
0x1f6c   :  { %2367 = vrot.lane.b32.xlu0 %v2366_v24, %s4514_s3 }
0x1fde   :  { %v2368_v25 = vpop.permute.xlu0 %2367 }
0x1fdf   :  { %4073 = vmatmul.mubr.msk.f32.vlgmr.msra.gmra.mrb[28].mxu1 %vm781_vm2, %v2368_v25 }
0x1fe0   :  { %4289 = vmatpush3.bf16.msra.mxu1 %v5245_v1  ;;  %4083 = vmatprep.mubr.msk.f32.mxu1 %vm4511_vm3, %v4512_v48 }
0x1fe1   :  { %4290 = vmatprep.subr.bf16.mxu1 %v4510_v39 }
0x1fe4   :  { %4292 = vmatpush3.bf16.msra.mxu1 %v5255_v8 }
0x1fe5   :  { %4293 = vmatprep.subr.bf16.mxu1 %v4510_v39 }
0x20b2   :  { %v2437_v26 = vpop.f32.mrb[28].mxu1 }
0x20b3   :  { %v2442_v5 = vrot.slane %v2437_v26, 2  ;;  %v4074_v27 = vpop.f32.mrb[29].mxu1 }
0x20b5   :  { %v2444_v28 = vadd.f32 %v2442_v5, %v5286_v16 }
0x20b7   :  { %4449 = vtanh.f32 %v2444_v28  ;;  %v3586_v31 = vmul.f32 -1.442695, %v2444_v28 }
0x20b9   :  { %4451 = vpow2.f32 %v3586_v31 }
0x20c1   :  { %v4450_v29 = vpop.eup %4449 }
0x20c2   :  { %2457 = vrot.lane.b32.xlu1 %v4450_v29, %s4513_s25 }
0x20c3   :  { %v4452_v33 = vpop.eup %4451 }
0x20c4   :  { %v2448_v34 = vadd.f32 1.0, %v4452_v33 }
0x20c6   :  { %4453 = vrcp.f32 %v2448_v34 }
0x20d0   :  { %v4454_v35 = vpop.eup %4453 }
0x20d1   :  { %v2455_v40 = vmul.f32 %v4454_v35, %v2453_v38 }
0x2134   :  { %v2458_v36 = vpop.permute.xlu1 %2457 }
0x2135   :  { %v2460_v37 = vmul.f32 %v4454_v35, %v2458_v36  ;;  %v3557_v36 = vld [vmem:[%s5481_s4] ss:$0 sm:$0xff] }
0x2137   :  { %2462 = vrot.lane.b32.xlu0 %v2460_v37, %s4514_s3  ;;  %v5367_v37 = vadd.f32 %v3557_v36, %v5100_v63 }
0x21a9   :  { %v2463_v41 = vpop.permute.xlu0 %2462 }
0x21aa   :  { %v2465_v42 = vadd.f32 %v2463_v41, %v2455_v40 }
0x21ac   :  { %4455 = vtanh.f32 %v2465_v42  ;;  %v2557_v13 = vrot.slane %v2465_v42, 6 }
0x21b6   :  { %v4456_v16 = vpop.eup %4455 }
0x21b7   :  { %2468 = vrot.lane.b32.xlu1 %v4456_v16, %s4513_s25 }
0x2229   :  { %v2469_v43 = vpop.permute.xlu1 %2468 }
0x222a   :  { %v2471_v2 = vmul.f32 %v4454_v35, %v2469_v43 }
0x222c   :  { %v2473_v4 = vrot.slane %v2471_v2, 6 }
0x222e   :  { %2474 = vrot.lane.b32.xlu0 %v2473_v4, %s4514_s3 }
0x22a0   :  { %v2475_v7 = vpop.permute.xlu0 %2474 }
0x22a1   :  { %4084 = vmatmul.mubr.msk.f32.vlgmr.msra.gmra.mrb[30].mxu1 %vm781_vm2, %v2475_v7 }
0x22a2   :  { %4295 = vmatpush3.bf16.msra.mxu1 %v5245_v1  ;;  %4094 = vmatprep.mubr.msk.f32.mxu1 %vm4511_vm3, %v4512_v48 }
0x22a3   :  { %4296 = vmatprep.subr.bf16.mxu1 %v4510_v39 }
0x22a6   :  { %4298 = vmatpush3.bf16.msra.mxu1 %v5255_v8 }
0x22a7   :  { %4305 = vmatprep.subr.bf16.mxu1 %v4510_v39 }
0x2374   :  { %v2544_v0 = vpop.f32.mrb[30].mxu1 }
0x2375   :  { %v2548_v45 = vadd.f32 %v2544_v0, %v5338_v44  ;;  %v4085_v46 = vpop.f32.mrb[31].mxu1 }
0x2377   :  { %4457 = vtanh.f32 %v2548_v45  ;;  %v3588_v32 = vmul.f32 -1.442695, %v2548_v45 }
0x2379   :  { %4459 = vpow2.f32 %v3588_v32 }
0x2381   :  { %v4458_v47 = vpop.eup %4457 }
0x2382   :  { %2561 = vrot.lane.b32.xlu1 %v4458_v47, %s4513_s25 }
0x2383   :  { %v4460_v51 = vpop.eup %4459 }
0x2384   :  { %v2552_v52 = vadd.f32 1.0, %v4460_v51 }
0x2386   :  { %4461 = vrcp.f32 %v2552_v52 }
0x2390   :  { %v4462_v54 = vpop.eup %4461 }
0x2391   :  { %v2559_v58 = vmul.f32 %v4462_v54, %v2557_v13 }
0x23f4   :  { %v2562_v30 = vpop.permute.xlu1 %2561 }
0x23f5   :  { %v2564_v56 = vmul.f32 %v4462_v54, %v2562_v30 }
0x23f7   :  { %2566 = vrot.lane.b32.xlu0 %v2564_v56, %s4514_s3 }
0x2469   :  { %v2567_v60 = vpop.permute.xlu0 %2566 }
0x246a   :  { %v2569_v61 = vadd.f32 %v2567_v60, %v2559_v58 }
0x246c   :  { %4463 = vtanh.f32 %v2569_v61  ;;  %v2663_v26 = vrot.slane %v2569_v61, 6 }
0x2476   :  { %v4464_v3 = vpop.eup %4463 }
0x2477   :  { %2572 = vrot.lane.b32.xlu1 %v4464_v3, %s4513_s25 }
0x24e9   :  { %v2573_v6 = vpop.permute.xlu1 %2572 }
0x24ea   :  { %v2575_v9 = vmul.f32 %v4462_v54, %v2573_v6  ;;  %v4509_v54 = vld [vmem:[%s5477_s8] ss:$0 sm:$0xff] }
0x24ec   :  { %2577 = vrot.lane.b32.xlu0 %v2575_v9, %s4514_s3 }
0x255e   :  { %v2578_v11 = vpop.permute.xlu0 %2577 }
0x255f   :  { %4095 = vmatmul.mubr.msk.f32.vlgmr.msra.gmra.mrb[32].mxu1 %vm781_vm2, %v2578_v11 }
0x2560   :  { %4307 = vmatpush3.bf16.msra.mxu1 %v5245_v1  ;;  %4116 = vmatprep.mubr.msk.f32.mxu1 %vm4511_vm3, %v4512_v48 }
0x2561   :  { %4308 = vmatprep.subr.bf16.mxu1 %v4510_v39 }
0x2564   :  { %4310 = vmatpush3.bf16.msra.mxu1 %v5255_v8 }
0x2565   :  { %4323 = vmatprep.subr.bf16.mxu1 %v4510_v39 }
0x2632   :  { %v2647_v12 = vpop.f32.mrb[32].mxu1 }
0x2633   :  { %v2652_v14 = vrot.slane %v2647_v12, 6  ;;  %v4096_v17 = vpop.f32.mrb[33].mxu1 }
0x2635   :  { %v2654_v18 = vadd.f32 %v2652_v14, %v5338_v44 }
0x2637   :  { %4465 = vtanh.f32 %v2654_v18  ;;  %v3590_v20 = vmul.f32 -1.442695, %v2654_v18 }
0x2639   :  { %4467 = vpow2.f32 %v3590_v20 }
0x2641   :  { %v4466_v19 = vpop.eup %4465 }
0x2642   :  { %2667 = vrot.lane.b32.xlu1 %v4466_v19, %s4513_s25 }
0x2643   :  { %v4468_v21 = vpop.eup %4467 }
0x2644   :  { %v2658_v22 = vadd.f32 1.0, %v4468_v21 }
0x2646   :  { %4469 = vrcp.f32 %v2658_v22 }
0x2650   :  { %v4470_v23 = vpop.eup %4469 }
0x2651   :  { %v2665_v5 = vmul.f32 %v4470_v23, %v2663_v26 }
0x26b4   :  { %v2668_v24 = vpop.permute.xlu1 %2667 }
0x26b5   :  { %v2670_v25 = vmul.f32 %v4470_v23, %v2668_v24 }
0x26b7   :  { %2672 = vrot.lane.b32.xlu0 %v2670_v25, %s4514_s3 }
0x2729   :  { %v2673_v27 = vpop.permute.xlu0 %2672 }
0x272a   :  { %v2675_v28 = vadd.f32 %v2673_v27, %v2665_v5 }
0x272c   :  { %4471 = vtanh.f32 %v2675_v28  ;;  %v2770_v4 = vrot.slane %v2675_v28, 6 }
0x2736   :  { %v4472_v29 = vpop.eup %4471 }
0x2737   :  { %2678 = vrot.lane.b32.xlu1 %v4472_v29, %s4513_s25 }
0x27a9   :  { %v2679_v31 = vpop.permute.xlu1 %2678 }
0x27aa   :  { %v2681_v33 = vmul.f32 %v4470_v23, %v2679_v31 }
0x27ac   :  { %v2683_v34 = vrot.slane %v2681_v33, 2 }
0x27ae   :  { %2684 = vrot.lane.b32.xlu0 %v2683_v34, %s4514_s3 }
0x2820   :  { %v2685_v35 = vpop.permute.xlu0 %2684 }
0x2821   :  { %4106 = vmatmul.mubr.msk.f32.vlgmr.msra.gmra.mrb[64].mxu0 %vm781_vm2, %v2685_v35 }
0x2822   :  { %4313 = vmatpush3.bf16.msra.mxu0 %v4925_v49  ;;  %4127 = vmatprep.mubr.msk.f32.mxu0 %vm4511_vm3, %v4512_v48 }
0x2823   :  { %4314 = vmatprep.subr.bf16.mxu0 %v4510_v39 }
0x2826   :  { %4316 = vmatpush3.bf16.msra.mxu0 %v5055_v53 }
0x2827   :  { %4317 = vmatprep.subr.bf16.mxu0 %v4510_v39 }
0x2829   :  { %4128 = vmatmul.mubr.msk.f32.vlgmr.msra.gmra.mrb[66].mxu0 %vm781_vm2, %v5367_v37 }
0x282a   :  { %4319 = vmatpush3.bf16.msra.mxu0 %v5075_v59  ;;  %4138 = vmatprep.mubr.msk.f32.mxu0 %vm4511_vm3, %v4512_v48 }
0x282b   :  { %4320 = vmatprep.subr.bf16.mxu0 %v4510_v39 }
0x282e   :  { %4322 = vmatpush3.bf16.msra.mxu0 %v5086_v62  ;;  %v2970_v62 = vrot.slane %v5259_v10, 6 }
0x282f   :  { %4335 = vmatprep.subr.bf16.mxu0 %v4510_v39 }
0x28f4   :  { %v2754_v49 = vpop.f32.mrb[64].mxu0 }
0x28f5   :  { %v2759_v53 = vrot.slane %v2754_v49, 4  ;;  %v4107_v63 = vpop.f32.mrb[65].mxu0 }
0x28f7   :  { %v2761_v38 = vadd.f32 %v2759_v53, %v5338_v44 }
0x28f9   :  { %4473 = vtanh.f32 %v2761_v38  ;;  %v3592_v41 = vmul.f32 -1.442695, %v2761_v38 }
0x28fb   :  { %4475 = vpow2.f32 %v3592_v41 }
0x2903   :  { %v4474_v40 = vpop.eup %4473 }
0x2904   :  { %2774 = vrot.lane.b32.xlu1 %v4474_v40, %s4513_s25 }
0x2905   :  { %v4476_v59 = vpop.eup %4475 }
0x2906   :  { %v2765_v42 = vadd.f32 1.0, %v4476_v59 }
0x2908   :  { %4477 = vrcp.f32 %v2765_v42 }
0x2912   :  { %v4478_v16 = vpop.eup %4477 }
0x2913   :  { %v2772_v7 = vmul.f32 %v4478_v16, %v2770_v4 }
0x2976   :  { %v2775_v43 = vpop.permute.xlu1 %2774 }
0x2977   :  { %v2777_v2 = vmul.f32 %v4478_v16, %v2775_v43 }
0x2979   :  { %2779 = vrot.lane.b32.xlu0 %v2777_v2, %s4514_s3 }
0x297d   :  { %2971 = vrot.lane.b32.xlu0 %v2970_v62, %s4514_s3 }
0x29eb   :  { %v2780_v0 = vpop.permute.xlu0 %2779 }
0x29ec   :  { %v2782_v45 = vadd.f32 %v2780_v0, %v2772_v7  ;;  %v3341_v0 = vld [vmem:[%s5482_s15 + $0x8] sm:$0xff] }
0x29ee   :  { %4479 = vtanh.f32 %v2782_v45 }
0x29ef   :  { %v2972_v46 = vpop.permute.xlu0 %2971 }
0x29f0   :  { %4139 = vmatmul.mubr.msk.f32.vlgmr.msra.gmra.mrb[66].mxu0 %vm781_vm2, %v2972_v46 }
0x29f1   :  { %4171 = vmatprep.mubr.msk.f32.mxu0 %vm4511_vm3, %v4512_v48 }
0x29f8   :  { %v4480_v47 = vpop.eup %4479 }
0x29f9   :  { %2785 = vrot.lane.b32.xlu1 %v4480_v47, %s4513_s25  ;;  %v3253_v47 = vld [vmem:[%s5483_s13 + $0x8] sm:$0xff] }
0x2a6b   :  { %v2786_v32 = vpop.permute.xlu1 %2785 }
0x2a6c   :  { %v2788_v51 = vmul.f32 %v4478_v16, %v2786_v32  ;;  %v3342_v32 = vld [vmem:[%s5482_s15 + $0x10] sm:$0xff] }
0x2a6e   :  { %v2790_v52 = vrot.slane %v2788_v51, 4  ;;  %v3343_v51 = vld [vmem:[%s5482_s15 + $0x18] sm:$0xff] }
0x2a70   :  { %2791 = vrot.lane.b32.xlu1 %v2790_v52, %s4514_s3 }
0x2ac3   :  { %v3041_v10 = vpop.f32.mrb[66].mxu0 }
0x2ac4   :  { %v4349_v30 = vadd.f32 %v4509_v54, %v3041_v10  ;;  %v4140_v56 = vpop.f32.mrb[67].mxu0  ;;  %v4345_v10 = vpack.c.bf16 %v3343_v51, %v3342_v32  ;;  %v3254_v54 = vld [vmem:[%s5483_s13 + $0x10] sm:$0xff] }
0x2ac5   :  { %v3338_v56 = vld [vmem:[%s5484_s12] sm:$0xff] }
0x2ac6   :  { %4481 = vtanh.f32 %v4349_v30  ;;  %v3597_v60 = vmul.f32 -1.442695, %v4349_v30  ;;  %v3255_v30 = vld [vmem:[%s5483_s13 + $0x18] sm:$0xff] }
0x2ac8   :  { %4483 = vpow2.f32 %v3597_v60 }
0x2ad0   :  { %v4482_v13 = vpop.eup %4481 }
0x2ad1   :  { %3058 = vrot.lane.b32.xlu0 %v4482_v13, %s4513_s25  ;;  %v4339_v13 = vpack.c.bf16 %v3255_v30, %v3254_v54 }
0x2ad2   :  { %v4484_v61 = vpop.eup %4483 }
0x2ad3   :  { %v3049_v3 = vadd.f32 1.0, %v4484_v61 }
0x2ad5   :  { %4485 = vrcp.f32 %v3049_v3 }
0x2adf   :  { %v4486_v6 = vpop.eup %4485 }
0x2ae2   :  { %v2792_v58 = vpop.permute.xlu1 %2791 }
0x2ae3   :  { %4117 = vmatmul.mubr.msk.f32.vlgmr.msra.gmra.mrb[34].mxu1 %vm781_vm2, %v2792_v58  ;;  %v3339_v58 = vld [vmem:[%s5484_s12 + $0x8] sm:$0xff] }
0x2ae4   :  { %4325 = vmatpush3.bf16.msra.mxu1 %v5226_v55  ;;  %4149 = vmatprep.mubr.msk.f32.mxu1 %vm4511_vm3, %v4512_v48  ;;  %v3054_v55 = vrot.slane %v5213_v50, 6 }
0x2ae5   :  { %4326 = vmatprep.subr.bf16.mxu1 %v4510_v39 }
0x2ae6   :  { %v3056_v18 = vmul.f32 %v4486_v6, %v3054_v55 }
0x2ae8   :  { %4328 = vmatpush3.bf16.msra.mxu1 %v5231_v57 }
0x2ae9   :  { %4329 = vmatprep.subr.bf16.mxu1 %v4510_v39 }
0x2b43   :  { %v3059_v9 = vpop.permute.xlu0 %3058 }
0x2b44   :  { %v3061_v11 = vmul.f32 %v4486_v6, %v3059_v9 }
0x2b46   :  { %3063 = vrot.lane.b32.xlu0 %v3061_v11, %s4514_s3  ;;  %v3433_v11 = vlaneseq }
0x2b48   :  { %v3434_v55 = vshrl.u32 %v3433_v11, 7 }
0x2bb6   :  { %v2861_v12 = vpop.f32.mrb[34].mxu1 }
0x2bb7   :  { %v2866_v14 = vrot.slane %v2861_v12, 2  ;;  %v4118_v17 = vpop.f32.mrb[35].mxu1  ;;  %v3461_v12 = vand.u32 127, %v3433_v11 }
0x2bb8   :  { %v3064_v19 = vpop.permute.xlu0 %3063  ;;  %v3601_v17 = vld [vmem:[%s5485_s14] ss:$0 sm:$0xff]  ;;  %s4515_s14 = smov 40  }
0x2bb9   :  { %v2868_v57 = vadd.f32 %v2866_v14, %v5338_v44  ;;  %v3066_v20 = vadd.f32 %v3064_v19, %v3056_v18  ;;  %v2877_v44 = vrot.slane %v2782_v45, 6  ;;  %v3252_v45 = vld [vmem:[%s5483_s13] sm:$0xff]  ;;  %v3464_v14 = vsub.s32 %v3461_v12, %v3434_v55 }
0x2bba   :  { %v4336_v52 = vpack.c.bf16 %v3253_v47, %v3252_v45  ;;  %v3603_v18 = vld [vmem:[%s5486_s16] ss:$0 sm:$0xff]  ;;  %v3435_v19 = vsub.s32 0, %v3434_v55 }
0x2bbb   :  { %4487 = vtanh.f32 %v2868_v57  ;;  %v3594_v23 = vmul.f32 -1.442695, %v2868_v57  ;;  %v3451_v57 = vsub.s32 1, %v3434_v55 }
0x2bbc   :  { %4489 = vtanh.f32 %v3066_v20  ;;  %4337 = vmatpush3.bf16.msra.mxu0 %v4336_v52 }
0x2bbd   :  { %4491 = vpow2.f32 %v3594_v23  ;;  %4338 = vmatprep.subr.bf16.mxu0 %v4510_v39 }
0x2bc0   :  { %4340 = vmatpush3.bf16.msra.mxu0 %v4339_v13 }
0x2bc5   :  { %v4488_v21 = vpop.eup %4487 }
0x2bc6   :  { %v4490_v22 = vpop.eup %4489  ;;  %2881 = vrot.lane.b32.xlu1 %v4488_v21, %s4513_s25 }
0x2bc7   :  { %3069 = vrot.lane.b32.xlu0 %v4490_v22, %s4513_s25  ;;  %v4492_v24 = vpop.eup %4491 }
0x2bc8   :  { %v2872_v50 = vadd.f32 1.0, %v4492_v24 }
0x2bca   :  { %4493 = vrcp.f32 %v2872_v50 }
0x2bd4   :  { %v4494_v25 = vpop.eup %4493 }
0x2bd5   :  { %v2879_v29 = vmul.f32 %v4494_v25, %v2877_v44 }
0x2c38   :  { %v2882_v26 = vpop.permute.xlu1 %2881 }
0x2c39   :  { %v3070_v5 = vpop.permute.xlu0 %3069  ;;  %v2884_v27 = vmul.f32 %v4494_v25, %v2882_v26 }
0x2c3a   :  { %v3072_v28 = vmul.f32 %v4486_v6, %v3070_v5 }
0x2c3b   :  { %2886 = vrot.lane.b32.xlu1 %v2884_v27, %s4514_s3  ;;  %v3606_v27 = vld [vmem:[%s5487_s17] ss:$0 sm:$0xff] }
0x2c3c   :  { %3074 = vrot.lane.b32.xlu0 %v3072_v28, %s4514_s3 }
0x2cad   :  { %v2887_v31 = vpop.permute.xlu1 %2886 }
0x2cae   :  { %v3075_v33 = vpop.permute.xlu0 %3074  ;;  %v2889_v34 = vadd.f32 %v2887_v31, %v2879_v29 }
0x2caf   :  { %4150 = vmatmul.mubr.msk.f32.vlgmr.msra.gmra.mrb[36].mxu1 %vm781_vm2, %v3075_v33 }
0x2cb0   :  { %4495 = vtanh.f32 %v2889_v34  ;;  %4331 = vmatpush3.bf16.msra.mxu1 %v5245_v1  ;;  %4160 = vmatprep.mubr.msk.f32.mxu1 %vm4511_vm3, %v4512_v48  ;;  %v3233_v2 = vrot.slane %v2889_v34, 6 }
0x2cb1   :  { %4332 = vmatprep.subr.bf16.mxu1 %v4510_v39 }
0x2cb4   :  { %4334 = vmatpush3.bf16.msra.mxu1 %v5255_v8 }
0x2cba   :  { %v4496_v35 = vpop.eup %4495 }
0x2cbb   :  { %2892 = vrot.lane.b32.xlu1 %v4496_v35, %s4513_s25 }
0x2d2d   :  { %v2893_v36 = vpop.permute.xlu1 %2892 }
0x2d2e   :  { %v2895_v49 = vmul.f32 %v4494_v25, %v2893_v36 }
0x2d30   :  { %v3149_v53 = vrot.slane %v2895_v49, 6 }
0x2d32   :  { %3150 = vrot.lane.b32.xlu1 %v3149_v53, %s4514_s3 }
0x2da4   :  { %v3151_v63 = vpop.permute.xlu1 %3150 }
0x2da5   :  { %4161 = vmatmul.mubr.msk.f32.vlgmr.msra.gmra.mrb[36].mxu1 %vm781_vm2, %v3151_v63 }
0x2da6   :  { %4182 = vmatprep.mubr.msk.f32.mxu1 %vm781_vm2, %v3338_v56 }
0x2e78   :  { %v3220_v38 = vpop.f32.mrb[36].mxu1 }
0x2e79   :  { %v4350_v1 = vadd.f32 %v5283_v15, %v3220_v38  ;;  %v4162_v40 = vpop.f32.mrb[37].mxu1  ;;  %v3340_v15 = vld [vmem:[%s5482_s15] sm:$0xff] }
0x2e7a   :  { %v4341_v46 = vpack.c.bf16 %v3341_v0, %v3340_v15 }
0x2e7b   :  { %4497 = vtanh.f32 %v4350_v1  ;;  %v3600_v8 = vmul.f32 -1.442695, %v4350_v1 }
0x2e7c   :  { %4342 = vmatprep.subr.bf16.mxu1 %v4341_v46 }
0x2e7d   :  { %4499 = vpow2.f32 %v3600_v8  ;;  %4344 = vmatpush3.bf16.msra.mxu1 %v4341_v46 }
0x2e7e   :  { %4346 = vmatprep.subr.bf16.mxu1 %v4345_v10 }
0x2e81   :  { %4348 = vmatpush3.bf16.msra.mxu1 %v4345_v10 }
0x2e84   :  { %4183 = vmatmul.mubr.msk.f32.vlgmr.msra.gmra.mrb[38].mxu1 %vm781_vm2, %v3339_v58 }
0x2e85   :  { %v4498_v48 = vpop.eup %4497 }
0x2e86   :  { %3237 = vrot.lane.b32.xlu0 %v4498_v48, %s4513_s25 }
0x2e87   :  { %v4500_v41 = vpop.eup %4499 }
0x2e88   :  { %v3228_v59 = vadd.f32 1.0, %v4500_v41 }
0x2e8a   :  { %4501 = vrcp.f32 %v3228_v59 }
0x2e94   :  { %v4502_v42 = vpop.eup %4501 }
0x2e95   :  { %v3235_v62 = vmul.f32 %v4502_v42, %v3233_v2 }
0x2ef8   :  { %v3238_v16 = vpop.permute.xlu0 %3237 }
0x2ef9   :  { %v3240_v43 = vmul.f32 %v4502_v42, %v3238_v16 }
0x2efb   :  { %3242 = vrot.lane.b32.xlu1 %v3240_v43, %s4514_s3 }
0x2f57   :  { %v4184_v39 = vpop.f32.mrb[38].mxu1 }
0x2f58   :  { %v3423_v9 = vpop.f32.mrb[39].mxu1  ;;  %v3429_v22 = vadd.f32 %v4184_v39, %v3603_v18 }
0x2f59   :  { %v3424_v24 = vadd.f32 %v3603_v18, %v3423_v9 }
0x2f6d   :  { %v3243_v4 = vpop.permute.xlu1 %3242 }
0x2f6e   :  { %v3245_v7 = vadd.f32 %v3243_v4, %v3235_v62 }
0x2f70   :  { %4503 = vtanh.f32 %v3245_v7 }
0x2f7a   :  { %v4504_v60 = vpop.eup %4503 }
0x2f7b   :  { %3248 = vrot.lane.b32.xlu0 %v4504_v60, %s4513_s25 }
0x2fed   :  { %v3249_v61 = vpop.permute.xlu0 %3248 }
0x2fee   :  { %v3251_v3 = vmul.f32 %v4502_v42, %v3249_v61 }
0x2ff0   :  { %3264 = vrot.lane.b32.xlu1 %v3251_v3, %s4514_s3 }
0x3062   :  { %v3265_v6 = vpop.permute.xlu1 %3264 }
0x3063   :  { %4172 = vmatmul.mubr.msk.f32.vlgmr.msra.gmra.mrb[68].mxu0 %vm781_vm2, %v3265_v6 }
0x3136   :  { %v3334_v20 = vpop.f32.mrb[68].mxu0 }
0x3137   :  { %v3335_v21 = vadd.f32 %v3601_v17, %v3334_v20  ;;  %v4173_v23 = vpop.f32.mrb[69].mxu0 }
0x3139   :  { %v3436_v50 = vrot.slane %v3335_v21, %v3435_v19  ;;  %v3452_v25 = vrot.slane %v3335_v21, %v3451_v57 }
0x313b   :  { %v3453_v26 = vadd.f32 %v3452_v25, %v3429_v22  ;;  %v3437_v5 = vadd.f32 %v3436_v50, %v3424_v24 }
0x313d   :  { %4505 = vtanh.f32 %v3453_v26 }
0x313e   :  { %4507 = vtanh.f32 %v3437_v5 }
0x3147   :  { %v4506_v28 = vpop.eup %4505 }
0x3148   :  { %v4508_v44 = vpop.eup %4507  ;;  %v3455_v29 = vmul.f32 %v4506_v28, %v3606_v27 }
0x3149   :  { %v3445_v31 = vmul.f32 %v4508_v44, %v3606_v27 }
0x314a   :  { %v3456_v33 = vsel %vm781_vm2, %v3455_v29, 0.0 }
0x314b   :  { %3457 = vadd.xlane.f32.xlu1 %v3456_v33  ;;  %v3446_v34 = vsel %vm781_vm2, %v3445_v31, 0.0 }
0x314c   :  { %3447 = vadd.xlane.f32.xlu0 %v3446_v34 }
0x315c   :  { %3477 = vrot.lane.b32.xlu1 %v5367_v37, %s4515_s14 }
0x3162   :  { %3474 = vrot.lane.b32.xlu0 %v3251_v3, %s4515_s14 }
0x31d8   :  { %v3458_v35 = vpop.xlane.xlu1 %3457 }
0x31d9   :  { %v3471_v36 = vrot.slane %v3458_v35, %v3464_v14  ;;  %v3448_v49 = vpop.xlane.xlu0 %3447 }
0x31da   :  { %v3465_v53 = vrot.slane %v3448_v49, %v3464_v14 }
0x31dc   :  { %v3478_v63 = vpop.permute.xlu1 %3477  ;;  %v3473_v38 = vsel %vm923_vm4, %v3465_v53, %v3471_v36 }
0x31dd   :  { %v3475_v1 = vpop.permute.xlu0 %3474 }
0x31de   :  { %v3481_v40 = vsel %vm3480_vm7, %v3473_v38, %v3475_v1 }
0x31df   :  { %v3483_v48 = vsel %vm3482_vm8, %v3481_v40, %v3478_v63 }
0x31e0   :  { %v3485_v8 = vsel %vm3484_vm9, %v3483_v48, 0.0 }
0x31e1   :  { %3486 = vst [vmem:[%s5488_s18] sm:$0x3] %v3485_v8 }

</bundles_post_ra>
